<compile_context>
chip_gen: v6e
topology: v6e:2x2x1
jax: 0.10.0
libtpu: 0.0.40
codegen_flags: <defaults>
</compile_context>

<pallas_src>
import functools

import jax
import jax.numpy as jnp
from jax.experimental import pallas as pl
from jax.experimental.pallas import tpu as pltpu

INPUT_DIM = 784          # 28*28; kept unpadded (full-dim blocks, no host pad copy)
HIDDEN_DIM = 400
HIDDEN_PAD = 512         # 4*128 lane-aligned hidden width (zero pad is inert)
LATENT_DIM = 20
HEAD_PAD = 128           # lane-dense packed mu||logvar width (cols 0:20 mu, 20:40 logvar)


def _round_up(a, m):
    return (a + m - 1) // m * m


def _vae_kernel(x_ref, eps_ref,
                w1_ref, b1_ref,
                wml_ref, bml_ref,
                w3_ref, b3_ref,
                w4_ref, b4_ref,
                xrec_ref, ml_ref):
    # encode: h = relu(x @ W1 + b1)     (bf16 operands, f32 accumulate)
    h = jnp.dot(x_ref[...], w1_ref[...],
                preferred_element_type=jnp.float32) + b1_ref[...]
    h = jnp.maximum(h, 0.0)                                         # (TB, 512) f32

    # fused mu/logvar head, padded to 128 lanes -> unmasked lane-dense store
    ml = jnp.dot(h.astype(jnp.bfloat16), wml_ref[...],
                 preferred_element_type=jnp.float32) + bml_ref[...]  # (TB, 128)
    mu = ml[:, :LATENT_DIM]
    logvar = ml[:, LATENT_DIM:2 * LATENT_DIM]

    # reparameterize (f32 elementwise): z = mu + eps * exp(0.5 * logvar)
    z = mu + eps_ref[...] * jnp.exp(0.5 * logvar)                   # (TB, 20) f32

    # decode: x_recon = sigmoid(relu(z @ W3 + b3) @ W4 + b4)
    h2 = jnp.dot(z.astype(jnp.bfloat16), w3_ref[...],
                 preferred_element_type=jnp.float32) + b3_ref[...]
    h2 = jnp.maximum(h2, 0.0)                                       # (TB, 512) f32
    logits = jnp.dot(h2.astype(jnp.bfloat16), w4_ref[...],
                     preferred_element_type=jnp.float32) + b4_ref[...]  # (TB, 784)

    # sigmoid via EUP exp + approx reciprocal (separate bundle slot, ~2^-12 rel err)
    xrec_ref[...] = pl.reciprocal(1.0 + jnp.exp(-logits), approx=True)
    ml_ref[...] = ml


@functools.partial(jax.jit, static_argnames=("tile_b",))
def vae_forward(x, eps, packed_params, tile_b=512):
    """x: (B, 1, 28, 28) or (B, 784) float.  eps: (B, 20) float.

    packed_params: output of pack_params() (bf16 weights, padded/fused).
    Returns (x_recon (B, 784) f32, mu (B, 20) f32, logvar (B, 20) f32).
    """
    (w1, b1, wml, bml, w3, b3, w4, b4) = packed_params

    tile_b = max(16, _round_up(int(tile_b), 16))

    # x / x_recon are ~97% of per-row HBM bytes -> stream x as bf16.
    # (In a real training loop store / cast the dataset to bf16 upstream so
    #  this astype is a no-op.)
    x2d = x.reshape(-1, INPUT_DIM).astype(jnp.bfloat16)
    eps = eps.astype(jnp.float32)
    B = x2d.shape[0]

    # Small batches: shrink the tile to a single sublane-aligned block rather
    # than padding to a full training-sized tile.
    if B <= tile_b:
        tb = max(16, _round_up(B, 16))
        Bp = tb
    else:
        tb = tile_b
        Bp = _round_up(B, tb)
    if Bp != B:
        x2d = jnp.pad(x2d, ((0, Bp - B), (0, 0)))
        eps = jnp.pad(eps, ((0, Bp - B), (0, 0)))

    grid = (Bp // tb,)

    def batch_spec(n):
        return pl.BlockSpec((tb, n), lambda i: (i, 0))

    def resident(shape):          # full-array block, constant index -> DMA'd once
        return pl.BlockSpec(shape, lambda i: (0, 0))
    # TODO(synk): on v7x with tile_b near the 64 MiB VMEM ceiling, add
    # pipeline_mode=pl.Buffered(1) to the resident weight specs to halve their
    # double-buffer reservation; unnecessary at the default tile (~12 MiB total).

    flops = 2 * Bp * (INPUT_DIM * HIDDEN_PAD
                      + HIDDEN_PAD * HEAD_PAD
                      + LATENT_DIM * HIDDEN_PAD
                      + HIDDEN_PAD * INPUT_DIM)
    transcendentals = Bp * (LATENT_DIM + 2 * INPUT_DIM)
    weight_bytes = sum(int(p.size) * p.dtype.itemsize for p in packed_params)
    bytes_accessed = (Bp * (INPUT_DIM * 2          # x   (bf16 in)
                            + LATENT_DIM * 4       # eps (f32 in)
                            + INPUT_DIM * 4        # x_recon (f32 out)
                            + HEAD_PAD * 4)        # mu||logvar (f32 out)
                      + weight_bytes)              # weights DMA'd once

    out_shapes = (
        jax.ShapeDtypeStruct((Bp, INPUT_DIM), jnp.float32),   # x_recon
        jax.ShapeDtypeStruct((Bp, HEAD_PAD), jnp.float32),    # mu || logvar (padded)
    )

    x_recon_p, ml = pl.pallas_call(
        _vae_kernel,
        out_shape=out_shapes,
        grid_spec=pltpu.PrefetchScalarGridSpec(
            num_scalar_prefetch=0,
            grid=grid,
            in_specs=[
                batch_spec(INPUT_DIM),                    # x    (bf16)
                batch_spec(LATENT_DIM),                   # eps  (f32)
                resident((INPUT_DIM, HIDDEN_PAD)),        # w1   (bf16)
                resident((1, HIDDEN_PAD)),                # b1   (f32)
                resident((HIDDEN_PAD, HEAD_PAD)),         # wml  (bf16, fused heads)
                resident((1, HEAD_PAD)),                  # bml  (f32)
                resident((LATENT_DIM, HIDDEN_PAD)),       # w3   (bf16)
                resident((1, HIDDEN_PAD)),                # b3   (f32)
                resident((HIDDEN_PAD, INPUT_DIM)),        # w4   (bf16)
                resident((1, INPUT_DIM)),                 # b4   (f32)
            ],
            out_specs=[batch_spec(INPUT_DIM), batch_spec(HEAD_PAD)],
        ),
        compiler_params=pltpu.CompilerParams(
            dimension_semantics=("parallel",),            # v7x dual-TC sharding
            vmem_limit_bytes=48 * 1024 * 1024,
        ),
        cost_estimate=pl.CostEstimate(
            flops=flops,
            transcendentals=transcendentals,
            bytes_accessed=bytes_accessed),
    )(x2d, eps, w1, b1, wml, bml, w3, b3, w4, b4)

    x_recon = x_recon_p[:B]
    mu = ml[:B, :LATENT_DIM]
    logvar = ml[:B, LATENT_DIM:2 * LATENT_DIM]
    return x_recon, mu, logvar


def init_params(key):
    """Logical (PyTorch-equivalent) parameters, f32.

    nn.Linear stores weight as (out, in); we store the transpose (in, out) so
    the math is y = x @ W + b.  Biases are (1, out).
    """
    def linear(key, fan_in, fan_out):
        kw, kb = jax.random.split(key)
        bound = 1.0 / jnp.sqrt(fan_in)
        w = jax.random.uniform(kw, (fan_in, fan_out), jnp.float32, -bound, bound)
        b = jax.random.uniform(kb, (1, fan_out), jnp.float32, -bound, bound)
        return w, b

    k1, k2, k3, k4, k5 = jax.random.split(key, 5)
    w1, b1 = linear(k1, INPUT_DIM, HIDDEN_DIM)
    wmu, bmu = linear(k2, HIDDEN_DIM, LATENT_DIM)
    wlv, blv = linear(k3, HIDDEN_DIM, LATENT_DIM)
    w3, b3 = linear(k4, LATENT_DIM, HIDDEN_DIM)
    w4, b4 = linear(k5, HIDDEN_DIM, INPUT_DIM)
    return (w1, b1, wmu, bmu, wlv, blv, w3, b3, w4, b4)


def pack_params(params):
    """One-time pack: pad hidden 400->512, fuse mu/logvar into a 128-lane head,
    cast weights to bf16 (biases stay f32).  All padding is zero -> inert."""
    (w1, b1, wmu, bmu, wlv, blv, w3, b3, w4, b4) = params
    hpad = HIDDEN_PAD - HIDDEN_DIM

    w1p = jnp.pad(w1, ((0, 0), (0, hpad)))                # (784, 512)
    b1p = jnp.pad(b1, ((0, 0), (0, hpad)))                # (1, 512): pad cols -> relu(0)=0

    wml = jnp.zeros((HIDDEN_PAD, HEAD_PAD), jnp.float32)  # (512, 128)
    wml = wml.at[:HIDDEN_DIM, :LATENT_DIM].set(wmu)
    wml = wml.at[:HIDDEN_DIM, LATENT_DIM:2 * LATENT_DIM].set(wlv)
    bml = jnp.zeros((1, HEAD_PAD), jnp.float32)
    bml = bml.at[:, :LATENT_DIM].set(bmu)
    bml = bml.at[:, LATENT_DIM:2 * LATENT_DIM].set(blv)

    w3p = jnp.pad(w3, ((0, 0), (0, hpad)))                # (20, 512)
    b3p = jnp.pad(b3, ((0, 0), (0, hpad)))                # (1, 512)
    w4p = jnp.pad(w4, ((0, hpad), (0, 0)))                # (512, 784): zero rows x zero h2 cols

    bf16 = jnp.bfloat16
    return (w1p.astype(bf16), b1p,
            wml.astype(bf16), bml,
            w3p.astype(bf16), b3p,
            w4p.astype(bf16), b4)


def vae_forward_ref(x, eps, params):
    """Pure-JAX reference using the same bf16-operand / f32-accumulate matmuls
    (sigmoid is exact here; kernel uses EUP approx reciprocal)."""
    (w1, b1, wmu, bmu, wlv, blv, w3, b3, w4, b4) = params
    x2d = x.reshape(-1, INPUT_DIM)

    def mm(a, w):
        return jnp.dot(a.astype(jnp.bfloat16), w.astype(jnp.bfloat16),
                       preferred_element_type=jnp.float32)

    h = jnp.maximum(mm(x2d, w1) + b1, 0.0)
    mu = mm(h, wmu) + bmu
    logvar = mm(h, wlv) + blv
    z = mu + eps * jnp.exp(0.5 * logvar)
    h2 = jnp.maximum(mm(z, w3) + b3, 0.0)
    x_recon = jax.nn.sigmoid(mm(h2, w4) + b4)
    return x_recon, mu, logvar


if __name__ == "__main__":
    key = jax.random.PRNGKey(0)
    k_param, k_x, k_eps = jax.random.split(key, 3)

    params = init_params(k_param)
    packed = pack_params(params)

    B = 2
    # MNIST-like NCHW input, flattened to (-1, 784) exactly like the module.
    x = jax.random.uniform(k_x, (B, 1, 28, 28), jnp.float32)
    # torch.randn_like-equivalent reparameterization noise, drawn outside the kernel.
    eps = jax.random.normal(k_eps, (B, LATENT_DIM), jnp.float32)

    x_recon, mu, logvar = vae_forward(x, eps, packed)
    jax.block_until_ready((x_recon, mu, logvar))

    assert x_recon.shape == (B, INPUT_DIM)
    assert mu.shape == (B, LATENT_DIM) and logvar.shape == (B, LATENT_DIM)

    # correctness vs a reference with identical bf16-matmul / f32-elementwise math;
    # x_recon tolerance is slightly looser for the approx-reciprocal sigmoid.
    xr_ref, mu_ref, lv_ref = vae_forward_ref(x, eps, params)
    assert jnp.allclose(x_recon, xr_ref, atol=2e-3, rtol=2e-3), \
        float(jnp.max(jnp.abs(x_recon - xr_ref)))
    assert jnp.allclose(mu, mu_ref, atol=1e-3, rtol=1e-3), \
        float(jnp.max(jnp.abs(mu - mu_ref)))
    assert jnp.allclose(logvar, lv_ref, atol=1e-3, rtol=1e-3), \
        float(jnp.max(jnp.abs(logvar - lv_ref)))

    print("KERNEL_OK")
</pallas_src>

<mosaic_0001>
module attributes {stable_mosaic.version = 11 : i64} {
  func.func @_vae_kernel(%arg0: i32, %arg1: memref<16x784xbf16, #tpu.memory_space<vmem>>, %arg2: memref<16x20xf32, #tpu.memory_space<vmem>>, %arg3: memref<784x512xbf16, #tpu.memory_space<vmem>>, %arg4: memref<1x512xf32, #tpu.memory_space<vmem>>, %arg5: memref<512x128xbf16, #tpu.memory_space<vmem>>, %arg6: memref<1x128xf32, #tpu.memory_space<vmem>>, %arg7: memref<20x512xbf16, #tpu.memory_space<vmem>>, %arg8: memref<1x512xf32, #tpu.memory_space<vmem>>, %arg9: memref<512x784xbf16, #tpu.memory_space<vmem>>, %arg10: memref<1x784xf32, #tpu.memory_space<vmem>>, %arg11: memref<16x784xf32, #tpu.memory_space<vmem>>, %arg12: memref<16x128xf32, #tpu.memory_space<vmem>>) attributes {dimension_semantics = [#tpu.dimension_semantics<parallel>], iteration_bounds = array<i64: 1>, scalar_prefetch = 0 : i64, scratch_operands = 0 : i64, tpu.core_type = #tpu.core_type<tc>, window_params = [{transform_indices = @transform_0, window_bounds = array<i64: 16, 784>}, {transform_indices = @transform_1, window_bounds = array<i64: 16, 20>}, {pipeline_mode = #tpu.pipeline_mode<synchronous>, transform_indices = @transform_2, window_bounds = array<i64: 784, 512>}, {pipeline_mode = #tpu.pipeline_mode<synchronous>, transform_indices = @transform_3, window_bounds = array<i64: 1, 512>}, {pipeline_mode = #tpu.pipeline_mode<synchronous>, transform_indices = @transform_4, window_bounds = array<i64: 512, 128>}, {pipeline_mode = #tpu.pipeline_mode<synchronous>, transform_indices = @transform_5, window_bounds = array<i64: 1, 128>}, {pipeline_mode = #tpu.pipeline_mode<synchronous>, transform_indices = @transform_6, window_bounds = array<i64: 20, 512>}, {pipeline_mode = #tpu.pipeline_mode<synchronous>, transform_indices = @transform_7, window_bounds = array<i64: 1, 512>}, {pipeline_mode = #tpu.pipeline_mode<synchronous>, transform_indices = @transform_8, window_bounds = array<i64: 512, 784>}, {pipeline_mode = #tpu.pipeline_mode<synchronous>, transform_indices = @transform_9, window_bounds = array<i64: 1, 784>}, {transform_indices = @transform_10, window_bounds = array<i64: 16, 784>}, {transform_indices = @transform_11, window_bounds = array<i64: 16, 128>}]} {
    %c0 = arith.constant 0 : index
    %c0_0 = arith.constant 0 : index
    %0 = vector.load %arg1[%c0, %c0_0] : memref<16x784xbf16, #tpu.memory_space<vmem>>, vector<16x784xbf16>
    %c0_1 = arith.constant 0 : index
    %c0_2 = arith.constant 0 : index
    %1 = vector.load %arg3[%c0_1, %c0_2] : memref<784x512xbf16, #tpu.memory_space<vmem>>, vector<784x512xbf16>
    %cst = arith.constant dense<0.000000e+00> : vector<16x512xf32>
    %2 = tpu.matmul %0, %1, %cst {dimension_numbers = #tpu.dot_dimension_numbers<[1], [0], [0], [1], [0, 0, 1, 1], [], []>} : vector<16x784xbf16>, vector<784x512xbf16>, vector<16x512xf32> -> vector<16x512xf32>
    %c0_3 = arith.constant 0 : index
    %c0_4 = arith.constant 0 : index
    %3 = vector.load %arg4[%c0_3, %c0_4] : memref<1x512xf32, #tpu.memory_space<vmem>>, vector<1x512xf32>
    %4 = vector.broadcast %3 : vector<1x512xf32> to vector<16x512xf32>
    %5 = arith.addf %2, %4 : vector<16x512xf32>
    %cst_5 = arith.constant 0.000000e+00 : f32
    %6 = vector.broadcast %cst_5 : f32 to vector<16x512xf32>
    %7 = arith.maximumf %5, %6 : vector<16x512xf32>
    %8 = arith.truncf %7 : vector<16x512xf32> to vector<16x512xbf16>
    %c0_6 = arith.constant 0 : index
    %c0_7 = arith.constant 0 : index
    %9 = vector.load %arg5[%c0_6, %c0_7] : memref<512x128xbf16, #tpu.memory_space<vmem>>, vector<512x128xbf16>
    %cst_8 = arith.constant dense<0.000000e+00> : vector<16x128xf32>
    %10 = tpu.matmul %8, %9, %cst_8 {dimension_numbers = #tpu.dot_dimension_numbers<[1], [0], [0], [1], [0, 0, 1, 1], [], []>} : vector<16x512xbf16>, vector<512x128xbf16>, vector<16x128xf32> -> vector<16x128xf32>
    %c0_9 = arith.constant 0 : index
    %c0_10 = arith.constant 0 : index
    %11 = vector.load %arg6[%c0_9, %c0_10] : memref<1x128xf32, #tpu.memory_space<vmem>>, vector<1x128xf32>
    %12 = vector.broadcast %11 : vector<1x128xf32> to vector<16x128xf32>
    %13 = arith.addf %10, %12 : vector<16x128xf32>
    %14 = vector.extract_strided_slice %13 {offsets = [0, 0], sizes = [16, 20], strides = [1, 1]} : vector<16x128xf32> to vector<16x20xf32>
    %15 = vector.extract_strided_slice %13 {offsets = [0, 20], sizes = [16, 20], strides = [1, 1]} : vector<16x128xf32> to vector<16x20xf32>
    %c0_11 = arith.constant 0 : index
    %c0_12 = arith.constant 0 : index
    %16 = vector.load %arg2[%c0_11, %c0_12] : memref<16x20xf32, #tpu.memory_space<vmem>>, vector<16x20xf32>
    %cst_13 = arith.constant 5.000000e-01 : f32
    %17 = vector.broadcast %cst_13 : f32 to vector<16x20xf32>
    %18 = arith.mulf %17, %15 : vector<16x20xf32>
    %19 = math.exp %18 : vector<16x20xf32>
    %20 = arith.mulf %16, %19 : vector<16x20xf32>
    %21 = arith.addf %14, %20 : vector<16x20xf32>
    %22 = arith.truncf %21 : vector<16x20xf32> to vector<16x20xbf16>
    %c0_14 = arith.constant 0 : index
    %c0_15 = arith.constant 0 : index
    %23 = vector.load %arg7[%c0_14, %c0_15] : memref<20x512xbf16, #tpu.memory_space<vmem>>, vector<20x512xbf16>
    %cst_16 = arith.constant dense<0.000000e+00> : vector<16x512xf32>
    %24 = tpu.matmul %22, %23, %cst_16 {dimension_numbers = #tpu.dot_dimension_numbers<[1], [0], [0], [1], [0, 0, 1, 1], [], []>} : vector<16x20xbf16>, vector<20x512xbf16>, vector<16x512xf32> -> vector<16x512xf32>
    %c0_17 = arith.constant 0 : index
    %c0_18 = arith.constant 0 : index
    %25 = vector.load %arg8[%c0_17, %c0_18] : memref<1x512xf32, #tpu.memory_space<vmem>>, vector<1x512xf32>
    %26 = vector.broadcast %25 : vector<1x512xf32> to vector<16x512xf32>
    %27 = arith.addf %24, %26 : vector<16x512xf32>
    %cst_19 = arith.constant 0.000000e+00 : f32
    %28 = vector.broadcast %cst_19 : f32 to vector<16x512xf32>
    %29 = arith.maximumf %27, %28 : vector<16x512xf32>
    %30 = arith.truncf %29 : vector<16x512xf32> to vector<16x512xbf16>
    %c0_20 = arith.constant 0 : index
    %c0_21 = arith.constant 0 : index
    %31 = vector.load %arg9[%c0_20, %c0_21] : memref<512x784xbf16, #tpu.memory_space<vmem>>, vector<512x784xbf16>
    %cst_22 = arith.constant dense<0.000000e+00> : vector<16x784xf32>
    %32 = tpu.matmul %30, %31, %cst_22 {dimension_numbers = #tpu.dot_dimension_numbers<[1], [0], [0], [1], [0, 0, 1, 1], [], []>} : vector<16x512xbf16>, vector<512x784xbf16>, vector<16x784xf32> -> vector<16x784xf32>
    %c0_23 = arith.constant 0 : index
    %c0_24 = arith.constant 0 : index
    %33 = vector.load %arg10[%c0_23, %c0_24] : memref<1x784xf32, #tpu.memory_space<vmem>>, vector<1x784xf32>
    %34 = vector.broadcast %33 : vector<1x784xf32> to vector<16x784xf32>
    %35 = arith.addf %32, %34 : vector<16x784xf32>
    %cst_25 = arith.constant 0.000000e+00 : f32
    %36 = vector.broadcast %cst_25 : f32 to vector<16x784xf32>
    %37 = arith.subf %36, %35 : vector<16x784xf32>
    %38 = math.exp %37 : vector<16x784xf32>
    %cst_26 = arith.constant 1.000000e+00 : f32
    %39 = vector.broadcast %cst_26 : f32 to vector<16x784xf32>
    %40 = arith.addf %39, %38 : vector<16x784xf32>
    %41 = tpu.reciprocal %40 {approx = true} : vector<16x784xf32> -> vector<16x784xf32>
    %c0_27 = arith.constant 0 : index
    %c0_28 = arith.constant 0 : index
    %42 = vector.load %arg11[%c0_27, %c0_28] : memref<16x784xf32, #tpu.memory_space<vmem>>, vector<16x784xf32>
    tpu.vector_store %arg11[%c0_27, %c0_28], %41 {strides = array<i32>} : memref<16x784xf32, #tpu.memory_space<vmem>>, vector<16x784xf32>,
    %c0_29 = arith.constant 0 : index
    %c0_30 = arith.constant 0 : index
    %43 = vector.load %arg12[%c0_29, %c0_30] : memref<16x128xf32, #tpu.memory_space<vmem>>, vector<16x128xf32>
    tpu.vector_store %arg12[%c0_29, %c0_30], %13 {strides = array<i32>} : memref<16x128xf32, #tpu.memory_space<vmem>>, vector<16x128xf32>,
    return
  }
  func.func @transform_0(%arg0: i32) -> (i32, i32) {
    %c0_i32 = arith.constant 0 : i32
    %c0_i32_0 = arith.constant 0 : i32
    return %arg0, %c0_i32 : i32, i32
  }
  func.func @transform_1(%arg0: i32) -> (i32, i32) {
    %c0_i32 = arith.constant 0 : i32
    %c0_i32_0 = arith.constant 0 : i32
    return %arg0, %c0_i32 : i32, i32
  }
  func.func @transform_2(%arg0: i32) -> (i32, i32) {
    %c0_i32 = arith.constant 0 : i32
    %c0_i32_0 = arith.constant 0 : i32
    %c0_i32_1 = arith.constant 0 : i32
    return %c0_i32, %c0_i32_0 : i32, i32
  }
  func.func @transform_3(%arg0: i32) -> (i32, i32) {
    %c0_i32 = arith.constant 0 : i32
    %c0_i32_0 = arith.constant 0 : i32
    %c0_i32_1 = arith.constant 0 : i32
    return %c0_i32, %c0_i32_0 : i32, i32
  }
  func.func @transform_4(%arg0: i32) -> (i32, i32) {
    %c0_i32 = arith.constant 0 : i32
    %c0_i32_0 = arith.constant 0 : i32
    %c0_i32_1 = arith.constant 0 : i32
    return %c0_i32, %c0_i32_0 : i32, i32
  }
  func.func @transform_5(%arg0: i32) -> (i32, i32) {
    %c0_i32 = arith.constant 0 : i32
    %c0_i32_0 = arith.constant 0 : i32
    %c0_i32_1 = arith.constant 0 : i32
    return %c0_i32, %c0_i32_0 : i32, i32
  }
  func.func @transform_6(%arg0: i32) -> (i32, i32) {
    %c0_i32 = arith.constant 0 : i32
    %c0_i32_0 = arith.constant 0 : i32
    %c0_i32_1 = arith.constant 0 : i32
    return %c0_i32, %c0_i32_0 : i32, i32
  }
  func.func @transform_7(%arg0: i32) -> (i32, i32) {
    %c0_i32 = arith.constant 0 : i32
    %c0_i32_0 = arith.constant 0 : i32
    %c0_i32_1 = arith.constant 0 : i32
    return %c0_i32, %c0_i32_0 : i32, i32
  }
  func.func @transform_8(%arg0: i32) -> (i32, i32) {
    %c0_i32 = arith.constant 0 : i32
    %c0_i32_0 = arith.constant 0 : i32
    %c0_i32_1 = arith.constant 0 : i32
    return %c0_i32, %c0_i32_0 : i32, i32
  }
  func.func @transform_9(%arg0: i32) -> (i32, i32) {
    %c0_i32 = arith.constant 0 : i32
    %c0_i32_0 = arith.constant 0 : i32
    %c0_i32_1 = arith.constant 0 : i32
    return %c0_i32, %c0_i32_0 : i32, i32
  }
  func.func @transform_10(%arg0: i32) -> (i32, i32) {
    %c0_i32 = arith.constant 0 : i32
    %c0_i32_0 = arith.constant 0 : i32
    return %arg0, %c0_i32 : i32, i32
  }
  func.func @transform_11(%arg0: i32) -> (i32, i32) {
    %c0_i32 = arith.constant 0 : i32
    %c0_i32_0 = arith.constant 0 : i32
    return %arg0, %c0_i32 : i32, i32
  }
}

</mosaic_0001>

<bundles_post_ra>
// kernel: vae_forward.1
= control target key start
LH: loop header
LB: loop body
LE: loop exit
PB: predicated region body
PF: predicated region fallthrough
CT: control target
= control target key end

     0   :  { %vm1279_vm0 = vcmask 130048   ;;  %vm2067_vm1 = vcmask 1041408   ;;  %s5348_s15 = smov 108   ;;  %vm2063_vm2 = vcmask 162816   ;;  %s6968_s2 = inlined_call_operand.vmem [shape: bf16[784,512], index: 2, kind: input, shape index: {}]   ;;  %s6969_s0 = inlined_call_operand.vmem [shape: bf16[16,784], index: 0, kind: input, shape index: {}]   ;;  %s6970_s4 = inlined_call_operand.vmem [shape: bf16[512,128], index: 4, kind: input, shape index: {}]   ;;  %s6971_s3 = inlined_call_operand.vmem [shape: f32[1,512], index: 3, kind: input, shape index: {}]   ;;  %s6972_s5 = inlined_call_operand.vmem [shape: f32[1,128], index: 5, kind: input, shape index: {}]   ;;  %s6973_s11 = inlined_call_operand.vmem [shape: f32[16,128], index: 11, kind: output, shape index: {1}]   ;;  %s6974_s6 = inlined_call_operand.vmem [shape: bf16[20,512], index: 6, kind: input, shape index: {}]   ;;  %s6975_s8 = inlined_call_operand.vmem [shape: bf16[512,784], index: 8, kind: input, shape index: {}]   ;;  %s6976_s1 = inlined_call_operand.vmem [shape: f32[16,20], index: 1, kind: input, shape index: {}]   ;;  %s6977_s7 = inlined_call_operand.vmem [shape: f32[1,512], index: 7, kind: input, shape index: {}]   ;;  %s6978_s9 = inlined_call_operand.vmem [shape: f32[1,784], index: 9, kind: input, shape index: {}]   ;;  %s6979_s10 = inlined_call_operand.vmem [shape: f32[16,784], index: 10, kind: output, shape index: {0}]  }
   0x1   :  { %v4621_v0 = vld [vmem:[%s6968_s2 + $0xe4] ss:$16 sps:$4 sm:$0xff]   ;;  %v4625_v2 = vld [vmem:[%s6968_s2 + $0xe0] ss:$16 sps:$4 sm:$0xff]   ;;  %v5567_v51 = vld [vmem:[%s6969_s0 + $0xc] ss:$28 sps:$4 sm:$0xff]  }
   0x2   :  { %v4623_v1 = vld [vmem:[%s6968_s2 + $0x2e4] ss:$16 sps:$4 sm:$0xff]   ;;  %1283 = vmatprep.subr.bf16.mxu0 %v4621_v0  ;;  %v4626_v3 = vld [vmem:[%s6968_s2 + $0x2e0] ss:$16 sps:$4 sm:$0xff]   ;;  %1358 = vmatprep.mubr.bf16.mxu1 %v5567_v51 }
   0x3   :  { %1326 = vmatprep.subr.bf16.mxu1 %v4623_v1  ;;  %v4627_v4 = vld [vmem:[%s6968_s2 + $0xc4] ss:$16 sps:$4 sm:$0xff]   ;;  %1284 = vmatpush1.bf16.msra.mxu0 %v4625_v2  ;;  %v4631_v6 = vld [vmem:[%s6968_s2 + $0xc0] ss:$16 sps:$4 sm:$0xff]  }
   0x4   :  { %1327 = vmatpush1.bf16.msra.mxu1 %v4626_v3  ;;  %v4629_v5 = vld [vmem:[%s6968_s2 + $0x2c4] ss:$16 sps:$4 sm:$0xff]   ;;  %1285 = vmatprep.subr.bf16.mxu0 %v4627_v4  ;;  %v4632_v7 = vld [vmem:[%s6968_s2 + $0x2c0] ss:$16 sps:$4 sm:$0xff]  }
   0x5   :  { %1328 = vmatprep.subr.bf16.mxu1 %v4629_v5  ;;  %v4633_v8 = vld [vmem:[%s6968_s2 + $0xa4] ss:$16 sps:$4 sm:$0xff]   ;;  %v4637_v10 = vld [vmem:[%s6968_s2 + $0xa0] ss:$16 sps:$4 sm:$0xff]  }
   0x6   :  { %v4635_v9 = vld [vmem:[%s6968_s2 + $0x2a4] ss:$16 sps:$4 sm:$0xff]   ;;  %v4638_v11 = vld [vmem:[%s6968_s2 + $0x2a0] ss:$16 sps:$4 sm:$0xff]  }
   0x7   :  { %1286 = vmatpush1.bf16.msra.mxu0 %v4631_v6  ;;  %v4639_v12 = vld [vmem:[%s6968_s2 + $0x84] ss:$16 sps:$4 sm:$0xff]   ;;  %v4643_v14 = vld [vmem:[%s6968_s2 + $0x80] ss:$16 sps:$4 sm:$0xff]  }
   0x8   :  { %1329 = vmatpush1.bf16.msra.mxu1 %v4632_v7  ;;  %1287 = vmatprep.subr.bf16.mxu0 %v4633_v8  ;;  %v4641_v13 = vld [vmem:[%s6968_s2 + $0x284] ss:$16 sps:$4 sm:$0xff]   ;;  %v4644_v15 = vld [vmem:[%s6968_s2 + $0x280] ss:$16 sps:$4 sm:$0xff]  }
   0x9   :  { %1330 = vmatprep.subr.bf16.mxu1 %v4635_v9  ;;  %v4645_v16 = vld [vmem:[%s6968_s2 + $0x64] ss:$16 sps:$4 sm:$0xff]   ;;  %v4649_v18 = vld [vmem:[%s6968_s2 + $0x60] ss:$16 sps:$4 sm:$0xff]   ;;  %v4734_v9 = vld [vmem:[%s6968_s2 + $0xec] ss:$16 sps:$4 sm:$0xff]  }
   0xa   :  { %v4647_v17 = vld [vmem:[%s6968_s2 + $0x264] ss:$16 sps:$4 sm:$0xff]   ;;  %v4650_v19 = vld [vmem:[%s6968_s2 + $0x260] ss:$16 sps:$4 sm:$0xff]  }
   0xb   :  { %1288 = vmatpush1.bf16.msra.mxu0 %v4637_v10  ;;  %v4651_v20 = vld [vmem:[%s6968_s2 + $0x44] ss:$16 sps:$4 sm:$0xff]   ;;  %v4655_v22 = vld [vmem:[%s6968_s2 + $0x40] ss:$16 sps:$4 sm:$0xff]  }
   0xc   :  { %1331 = vmatpush1.bf16.msra.mxu1 %v4638_v11  ;;  %1289 = vmatprep.subr.bf16.mxu0 %v4639_v12  ;;  %v4653_v21 = vld [vmem:[%s6968_s2 + $0x244] ss:$16 sps:$4 sm:$0xff]   ;;  %v4656_v23 = vld [vmem:[%s6968_s2 + $0x240] ss:$16 sps:$4 sm:$0xff]   ;;  %v5347_v11 = vmov 0  }
   0xd   :  { %1332 = vmatprep.subr.bf16.mxu1 %v4641_v13  ;;  %v4657_v24 = vld [vmem:[%s6968_s2 + $0x24] ss:$16 sps:$4 sm:$0xff]   ;;  %v4661_v26 = vld [vmem:[%s6968_s2 + $0x20] ss:$16 sps:$4 sm:$0xff]   ;;  %v4732_v13 = vld [vmem:[%s6968_s2 + $0xe8] ss:$16 sps:$4 sm:$0xff]  }
   0xe   :  { %v4659_v25 = vld [vmem:[%s6968_s2 + $0x224] ss:$16 sps:$4 sm:$0xff]   ;;  %v4662_v27 = vld [vmem:[%s6968_s2 + $0x220] ss:$16 sps:$4 sm:$0xff]  }
   0xf   :  { %1290 = vmatpush1.bf16.msra.mxu0 %v4643_v14  ;;  %v4663_v28 = vld [vmem:[%s6968_s2 + $0x4] ss:$16 sps:$4 sm:$0xff]   ;;  %v4667_v30 = vld [vmem:[%s6968_s2] ss:$16 sps:$4 sm:$0xff]  }
  0x10   :  { %1333 = vmatpush1.bf16.msra.mxu1 %v4644_v15  ;;  %1291 = vmatprep.subr.bf16.mxu0 %v4645_v16  ;;  %v4665_v29 = vld [vmem:[%s6968_s2 + $0x204] ss:$16 sps:$4 sm:$0xff]   ;;  %v4668_v31 = vld [vmem:[%s6968_s2 + $0x200] ss:$16 sps:$4 sm:$0xff]   ;;  %v4741_v16 = vld [vmem:[%s6968_s2 + $0xcc] ss:$16 sps:$4 sm:$0xff]  }
  0x11   :  { %1334 = vmatprep.subr.bf16.mxu1 %v4647_v17  ;;  %v4669_v32 = vld [vmem:[%s6968_s2 + $0x1e4] ss:$16 sps:$4 sm:$0xff]   ;;  %v4673_v34 = vld [vmem:[%s6968_s2 + $0x1e0] ss:$16 sps:$4 sm:$0xff]  }
  0x12   :  { %v4671_v33 = vld [vmem:[%s6968_s2 + $0x3e4] ss:$16 sps:$4 sm:$0xff]   ;;  %v4674_v35 = vld [vmem:[%s6968_s2 + $0x3e0] ss:$16 sps:$4 sm:$0xff]  }
  0x13   :  { %1292 = vmatpush1.bf16.msra.mxu0 %v4649_v18  ;;  %v4675_v36 = vld [vmem:[%s6968_s2 + $0x1c4] ss:$16 sps:$4 sm:$0xff]   ;;  %v4679_v38 = vld [vmem:[%s6968_s2 + $0x1c0] ss:$16 sps:$4 sm:$0xff]   ;;  %v4739_v18 = vld [vmem:[%s6968_s2 + $0xc8] ss:$16 sps:$4 sm:$0xff]  }
  0x14   :  { %1335 = vmatpush1.bf16.msra.mxu1 %v4650_v19  ;;  %1293 = vmatprep.subr.bf16.mxu0 %v4651_v20  ;;  %v4677_v37 = vld [vmem:[%s6968_s2 + $0x3c4] ss:$16 sps:$4 sm:$0xff]   ;;  %v4680_v39 = vld [vmem:[%s6968_s2 + $0x3c0] ss:$16 sps:$4 sm:$0xff]   ;;  %v4747_v20 = vld [vmem:[%s6968_s2 + $0xac] ss:$16 sps:$4 sm:$0xff]  }
  0x15   :  { %1336 = vmatprep.subr.bf16.mxu1 %v4653_v21  ;;  %v4681_v40 = vld [vmem:[%s6968_s2 + $0x1a4] ss:$16 sps:$4 sm:$0xff]   ;;  %v4685_v42 = vld [vmem:[%s6968_s2 + $0x1a0] ss:$16 sps:$4 sm:$0xff]  }
  0x16   :  { %v4683_v41 = vld [vmem:[%s6968_s2 + $0x3a4] ss:$16 sps:$4 sm:$0xff]   ;;  %v4686_v43 = vld [vmem:[%s6968_s2 + $0x3a0] ss:$16 sps:$4 sm:$0xff]  }
  0x17   :  { %1294 = vmatpush1.bf16.msra.mxu0 %v4655_v22  ;;  %v4687_v44 = vld [vmem:[%s6968_s2 + $0x184] ss:$16 sps:$4 sm:$0xff]   ;;  %v4691_v46 = vld [vmem:[%s6968_s2 + $0x180] ss:$16 sps:$4 sm:$0xff]   ;;  %v4745_v22 = vld [vmem:[%s6968_s2 + $0xa8] ss:$16 sps:$4 sm:$0xff]  }
  0x18   :  { %1337 = vmatpush1.bf16.msra.mxu1 %v4656_v23  ;;  %1295 = vmatprep.subr.bf16.mxu0 %v4657_v24  ;;  %v4689_v45 = vld [vmem:[%s6968_s2 + $0x384] ss:$16 sps:$4 sm:$0xff]   ;;  %v4692_v47 = vld [vmem:[%s6968_s2 + $0x380] ss:$16 sps:$4 sm:$0xff]   ;;  %v4753_v24 = vld [vmem:[%s6968_s2 + $0x8c] ss:$16 sps:$4 sm:$0xff]  }
  0x19   :  { %1338 = vmatprep.subr.bf16.mxu1 %v4659_v25  ;;  %v4693_v48 = vld [vmem:[%s6968_s2 + $0x164] ss:$16 sps:$4 sm:$0xff]   ;;  %v4697_v52 = vld [vmem:[%s6968_s2 + $0x160] ss:$16 sps:$4 sm:$0xff]  }
  0x1a   :  { %v5559_v49 = vld [vmem:[%s6969_s0 + $0x4] ss:$28 sps:$4 sm:$0xff]   ;;  %v5656_v14 = vld [vmem:[%s6969_s0 + $0x18] ss:$28 sps:$4 sm:$0xff]  }
  0x1b   :  { %1296 = vmatpush1.bf16.msra.mxu0 %v4661_v26  ;;  %v4695_v50 = vld [vmem:[%s6968_s2 + $0x364] ss:$16 sps:$4 sm:$0xff]   ;;  %1315 = vmatprep.mubr.bf16.mxu0 %v5559_v49  ;;  %v4698_v53 = vld [vmem:[%s6968_s2 + $0x360] ss:$16 sps:$4 sm:$0xff]   ;;  %v4751_v26 = vld [vmem:[%s6968_s2 + $0x88] ss:$16 sps:$4 sm:$0xff]  }
  0x1c   :  { %1339 = vmatpush1.bf16.msra.mxu1 %v4662_v27  ;;  %1297 = vmatprep.subr.bf16.mxu0 %v4663_v28  ;;  %v4699_v54 = vld [vmem:[%s6968_s2 + $0x144] ss:$16 sps:$4 sm:$0xff]   ;;  %v4703_v56 = vld [vmem:[%s6968_s2 + $0x140] ss:$16 sps:$4 sm:$0xff]   ;;  %v4759_v28 = vld [vmem:[%s6968_s2 + $0x6c] ss:$16 sps:$4 sm:$0xff]  }
  0x1d   :  { %1340 = vmatprep.subr.bf16.mxu1 %v4665_v29  ;;  %v4701_v55 = vld [vmem:[%s6968_s2 + $0x344] ss:$16 sps:$4 sm:$0xff]   ;;  %v4704_v57 = vld [vmem:[%s6968_s2 + $0x340] ss:$16 sps:$4 sm:$0xff]  }
  0x1e   :  { %v4705_v58 = vld [vmem:[%s6968_s2 + $0x124] ss:$16 sps:$4 sm:$0xff]   ;;  %v4709_v60 = vld [vmem:[%s6968_s2 + $0x120] ss:$16 sps:$4 sm:$0xff]  }
  0x1f   :  { %1298 = vmatpush1.bf16.msra.mxu0 %v4667_v30  ;;  %v4707_v59 = vld [vmem:[%s6968_s2 + $0x324] ss:$16 sps:$4 sm:$0xff]   ;;  %v4710_v61 = vld [vmem:[%s6968_s2 + $0x320] ss:$16 sps:$4 sm:$0xff]   ;;  %v4757_v30 = vld [vmem:[%s6968_s2 + $0x68] ss:$16 sps:$4 sm:$0xff]  }
  0x20   :  { %1341 = vmatpush1.bf16.msra.mxu1 %v4668_v31  ;;  %1299 = vmatprep.subr.bf16.mxu0 %v4669_v32  ;;  %v4711_v62 = vld [vmem:[%s6968_s2 + $0x104] ss:$16 sps:$4 sm:$0xff]   ;;  %v4715_v0 = vld [vmem:[%s6968_s2 + $0x100] ss:$16 sps:$4 sm:$0xff]   ;;  %v4765_v32 = vld [vmem:[%s6968_s2 + $0x4c] ss:$16 sps:$4 sm:$0xff]  }
  0x21   :  { %1342 = vmatprep.subr.bf16.mxu1 %v4671_v33  ;;  %v4713_v63 = vld [vmem:[%s6968_s2 + $0x304] ss:$16 sps:$4 sm:$0xff]   ;;  %v4716_v1 = vld [vmem:[%s6968_s2 + $0x300] ss:$16 sps:$4 sm:$0xff]  }
  0x22   :  { %v4725_v2 = vld [vmem:[%s6968_s2 + $0x4e4] ss:$16 sps:$4 sm:$0xff]   ;;  %v5622_v4 = vld [vmem:[%s6969_s0] ss:$28 sps:$4 sm:$0xff]  }
  0x23   :  { %1300 = vmatpush2.bf16.msra.mxu0 %v4673_v34  ;;  %v4728_v3 = vld [vmem:[%s6968_s2 + $0x604] ss:$16 sps:$4 sm:$0xff]   ;;  %v4723_v6 = vld [vmem:[%s6968_s2 + $0x4e0] ss:$16 sps:$4 sm:$0xff]  }
  0x24   :  { %1343 = vmatpush2.bf16.msra.mxu1 %v4674_v35  ;;  %1301 = vmatprep.subr.bf16.mxu0 %v4675_v36  ;;  %v5627_v5 = vld [vmem:[%s6969_s0 + $0x8] ss:$28 sps:$4 sm:$0xff]   ;;  %v4726_v7 = vld [vmem:[%s6968_s2 + $0x600] ss:$16 sps:$4 sm:$0xff]  }
  0x25   :  { %1344 = vmatprep.subr.bf16.mxu1 %v4677_v37  ;;  %v4731_v8 = vld [vmem:[%s6968_s2 + $0x4c4] ss:$16 sps:$4 sm:$0xff]   ;;  %v4729_v10 = vld [vmem:[%s6968_s2 + $0x4c0] ss:$16 sps:$4 sm:$0xff]   ;;  %v4763_v35 = vld [vmem:[%s6968_s2 + $0x48] ss:$16 sps:$4 sm:$0xff]  }
  0x26   :  { %v4737_v12 = vld [vmem:[%s6968_s2 + $0x4a4] ss:$16 sps:$4 sm:$0xff]   ;;  %v4735_v15 = vld [vmem:[%s6968_s2 + $0x4a0] ss:$16 sps:$4 sm:$0xff]   ;;  %v4771_v37 = vld [vmem:[%s6968_s2 + $0x2c] ss:$16 sps:$4 sm:$0xff]  }
  0x27   :  { %1302 = vmatpush2.bf16.msra.mxu0 %v4679_v38  ;;  %v4744_v17 = vld [vmem:[%s6968_s2 + $0x484] ss:$16 sps:$4 sm:$0xff]   ;;  %v4742_v19 = vld [vmem:[%s6968_s2 + $0x480] ss:$16 sps:$4 sm:$0xff]  }
  0x28   :  { %1345 = vmatpush2.bf16.msra.mxu1 %v4680_v39  ;;  %1303 = vmatprep.subr.bf16.mxu0 %v4681_v40  ;;  %v4750_v21 = vld [vmem:[%s6968_s2 + $0x464] ss:$16 sps:$4 sm:$0xff]   ;;  %v4748_v23 = vld [vmem:[%s6968_s2 + $0x460] ss:$16 sps:$4 sm:$0xff]   ;;  %v4769_v39 = vld [vmem:[%s6968_s2 + $0x28] ss:$16 sps:$4 sm:$0xff]  }
  0x29   :  { %1346 = vmatprep.subr.bf16.mxu1 %v4683_v41  ;;  %v4756_v25 = vld [vmem:[%s6968_s2 + $0x444] ss:$16 sps:$4 sm:$0xff]   ;;  %v4754_v27 = vld [vmem:[%s6968_s2 + $0x440] ss:$16 sps:$4 sm:$0xff]   ;;  %v4777_v41 = vld [vmem:[%s6968_s2 + $0xc] ss:$16 sps:$4 sm:$0xff]  }
  0x2a   :  { %v4762_v29 = vld [vmem:[%s6968_s2 + $0x424] ss:$16 sps:$4 sm:$0xff]   ;;  %v4760_v31 = vld [vmem:[%s6968_s2 + $0x420] ss:$16 sps:$4 sm:$0xff]  }
  0x2b   :  { %1304 = vmatpush2.bf16.msra.mxu0 %v4685_v42  ;;  %v5718_v33 = vld [vmem:[%s6969_s0 + $0x14] ss:$28 sps:$4 sm:$0xff]  }
  0x2c   :  { %1347 = vmatpush2.bf16.msra.mxu1 %v4686_v43  ;;  %1305 = vmatprep.subr.bf16.mxu0 %v4687_v44  ;;  %v4768_v34 = vld [vmem:[%s6968_s2 + $0x404] ss:$16 sps:$4 sm:$0xff]   ;;  %v4766_v36 = vld [vmem:[%s6968_s2 + $0x400] ss:$16 sps:$4 sm:$0xff]   ;;  %v4775_v43 = vld [vmem:[%s6968_s2 + $0x8] ss:$16 sps:$4 sm:$0xff]  }
  0x2d   :  { %1348 = vmatprep.subr.bf16.mxu1 %v4689_v45  ;;  %v4774_v38 = vld [vmem:[%s6968_s2 + $0x5e4] ss:$16 sps:$4 sm:$0xff]   ;;  %v4772_v40 = vld [vmem:[%s6968_s2 + $0x5e0] ss:$16 sps:$4 sm:$0xff]   ;;  %v4783_v45 = vld [vmem:[%s6968_s2 + $0x1ec] ss:$16 sps:$4 sm:$0xff]  }
  0x2e   :  { %v4780_v42 = vld [vmem:[%s6968_s2 + $0x5c4] ss:$16 sps:$4 sm:$0xff]   ;;  %v4778_v44 = vld [vmem:[%s6968_s2 + $0x5c0] ss:$16 sps:$4 sm:$0xff]  }
  0x2f   :  { %1306 = vmatpush2.bf16.msra.mxu0 %v4691_v46  ;;  %v4786_v46 = vld [vmem:[%s6968_s2 + $0x5a4] ss:$16 sps:$4 sm:$0xff]  }
  0x30   :  { %1349 = vmatpush2.bf16.msra.mxu1 %v4692_v47  ;;  %1307 = vmatprep.subr.bf16.mxu0 %v4693_v48  ;;  %v4781_v47 = vld [vmem:[%s6968_s2 + $0x1e8] ss:$16 sps:$4 sm:$0xff]   ;;  %v4784_v48 = vld [vmem:[%s6968_s2 + $0x5a0] ss:$16 sps:$4 sm:$0xff]  }
  0x31   :  { %1350 = vmatprep.subr.bf16.mxu1 %v4695_v50  ;;  %v4792_v50 = vld [vmem:[%s6968_s2 + $0x584] ss:$16 sps:$4 sm:$0xff]  }
  0x33   :  { %1308 = vmatpush2.bf16.msra.mxu0 %v4697_v52  ;;  %v4787_v52 = vld [vmem:[%s6968_s2 + $0x1c8] ss:$16 sps:$4 sm:$0xff]  }
  0x34   :  { %1351 = vmatpush2.bf16.msra.mxu1 %v4698_v53  ;;  %1309 = vmatprep.subr.bf16.mxu0 %v4699_v54  ;;  %v4790_v53 = vld [vmem:[%s6968_s2 + $0x580] ss:$16 sps:$4 sm:$0xff]   ;;  %v4795_v54 = vld [vmem:[%s6968_s2 + $0x1ac] ss:$16 sps:$4 sm:$0xff]  }
  0x35   :  { %1352 = vmatprep.subr.bf16.mxu1 %v4701_v55  ;;  %v4798_v55 = vld [vmem:[%s6968_s2 + $0x564] ss:$16 sps:$4 sm:$0xff]  }
  0x37   :  { %1310 = vmatpush2.bf16.msra.mxu0 %v4703_v56  ;;  %v4793_v56 = vld [vmem:[%s6968_s2 + $0x1a8] ss:$16 sps:$4 sm:$0xff]  }
  0x38   :  { %1353 = vmatpush2.bf16.msra.mxu1 %v4704_v57  ;;  %1311 = vmatprep.subr.bf16.mxu0 %v4705_v58  ;;  %v4796_v57 = vld [vmem:[%s6968_s2 + $0x560] ss:$16 sps:$4 sm:$0xff]   ;;  %v4801_v58 = vld [vmem:[%s6968_s2 + $0x18c] ss:$16 sps:$4 sm:$0xff]  }
  0x39   :  { %1354 = vmatprep.subr.bf16.mxu1 %v4707_v59  ;;  %v4804_v59 = vld [vmem:[%s6968_s2 + $0x544] ss:$16 sps:$4 sm:$0xff]  }
  0x3b   :  { %1312 = vmatpush2.bf16.msra.mxu0 %v4709_v60  ;;  %v4799_v60 = vld [vmem:[%s6968_s2 + $0x188] ss:$16 sps:$4 sm:$0xff]  }
  0x3c   :  { %1355 = vmatpush2.bf16.msra.mxu1 %v4710_v61  ;;  %1313 = vmatprep.subr.bf16.mxu0 %v4711_v62  ;;  %v4802_v61 = vld [vmem:[%s6968_s2 + $0x540] ss:$16 sps:$4 sm:$0xff]   ;;  %v4807_v62 = vld [vmem:[%s6968_s2 + $0x16c] ss:$16 sps:$4 sm:$0xff]  }
  0x3d   :  { %1356 = vmatprep.subr.bf16.mxu1 %v4713_v63  ;;  %v4810_v63 = vld [vmem:[%s6968_s2 + $0x524] ss:$16 sps:$4 sm:$0xff]  }
  0x3f   :  { %1314 = vmatpush2.bf16.msra.mxu0 %v4715_v0  ;;  %v4805_v0 = vld [vmem:[%s6968_s2 + $0x168] ss:$16 sps:$4 sm:$0xff]  }
  0x40   :  { %1357 = vmatpush2.bf16.msra.mxu1 %v4716_v1  ;;  %1369 = vmatprep.subr.bf16.mxu0 %v4725_v2  ;;  %v4808_v1 = vld [vmem:[%s6968_s2 + $0x520] ss:$16 sps:$4 sm:$0xff]   ;;  %v4813_v2 = vld [vmem:[%s6968_s2 + $0x14c] ss:$16 sps:$4 sm:$0xff]  }
  0x41   :  { %1426 = vmatprep.subr.bf16.mxu1 %v4728_v3  ;;  %v4816_v3 = vld [vmem:[%s6968_s2 + $0x504] ss:$16 sps:$4 sm:$0xff]  }
  0x42   :  { %1316 = vmatmul.mubr.bf16.vlgmr.msra.gmra.mxu0 %v5622_v4 }
  0x43   :  { %1359 = vmatmul.mubr.bf16.vlgmr.msra.gmra.mxu1 %v5627_v5  ;;  %1370 = vmatpush1.bf16.msra.mxu0 %v4723_v6  ;;  %v4811_v6 = vld [vmem:[%s6968_s2 + $0x148] ss:$16 sps:$4 sm:$0xff]  }
  0x44   :  { %1427 = vmatpush1.bf16.msra.mxu1 %v4726_v7  ;;  %1371 = vmatprep.subr.bf16.mxu0 %v4731_v8  ;;  %v4814_v7 = vld [vmem:[%s6968_s2 + $0x500] ss:$16 sps:$4 sm:$0xff]   ;;  %v4822_v8 = vld [vmem:[%s6968_s2 + $0x12c] ss:$16 sps:$4 sm:$0xff]  }
  0x45   :  { %1444 = vmatprep.mubr.bf16.mxu1 %v5347_v11  ;;  %1455 = vmatprep.subr.bf16.mxu1 %v4734_v9  ;;  %v4825_v9 = vld [vmem:[%s6968_s2 + $0x2ec] ss:$16 sps:$4 sm:$0xff]  }
  0x46   :  { %1401 = vmatprep.mubr.bf16.mxu0 %v5718_v33 }
  0x47   :  { %1372 = vmatpush1.bf16.msra.mxu0 %v4729_v10  ;;  %v5835_v10 = vld [vmem:[%s6969_s0 + $0x10] ss:$28 sps:$4 sm:$0xff]  }
  0x48   :  { %1373 = vmatprep.subr.bf16.mxu0 %v4737_v12  ;;  %v4820_v12 = vld [vmem:[%s6968_s2 + $0x128] ss:$16 sps:$4 sm:$0xff]  }
  0x4b   :  { %4260 = vmatmul.mubr.msk.bf16.vlgmr.msra.gmra.mxu1 %vm1279_vm0, %v5656_v14  ;;  %1374 = vmatpush1.bf16.msra.mxu0 %v4735_v15  ;;  %v4828_v15 = vld [vmem:[%s6968_s2 + $0x10c] ss:$16 sps:$4 sm:$0xff]  }
  0x4c   :  { %1456 = vmatpush1.bf16.msra.mxu1 %v4732_v13  ;;  %1375 = vmatprep.subr.bf16.mxu0 %v4744_v17  ;;  %v4823_v13 = vld [vmem:[%s6968_s2 + $0x2e8] ss:$16 sps:$4 sm:$0xff]  }
  0x4d   :  { %1457 = vmatprep.subr.bf16.mxu1 %v4741_v16  ;;  %1487 = vmatprep.mubr.bf16.mxu1 %v5559_v49  ;;  %v4789_v49 = vld [vmem:[%s6968_s2 + $0x1cc] ss:$16 sps:$4 sm:$0xff]   ;;  %v4826_v17 = vld [vmem:[%s6968_s2 + $0x108] ss:$16 sps:$4 sm:$0xff]  }
  0x4e   :  { %v4831_v16 = vld [vmem:[%s6968_s2 + $0x2cc] ss:$16 sps:$4 sm:$0xff]  }
  0x4f   :  { %1376 = vmatpush1.bf16.msra.mxu0 %v4742_v19  ;;  %v4834_v19 = vld [vmem:[%s6968_s2 + $0x4ec] ss:$16 sps:$4 sm:$0xff]  }
  0x50   :  { %1458 = vmatpush1.bf16.msra.mxu1 %v4739_v18  ;;  %1377 = vmatprep.subr.bf16.mxu0 %v4750_v21  ;;  %v4829_v18 = vld [vmem:[%s6968_s2 + $0x2c8] ss:$16 sps:$4 sm:$0xff]  }
  0x51   :  { %1459 = vmatprep.subr.bf16.mxu1 %v4747_v20  ;;  %v4837_v20 = vld [vmem:[%s6968_s2 + $0x2ac] ss:$16 sps:$4 sm:$0xff]   ;;  %v4832_v21 = vld [vmem:[%s6968_s2 + $0x4e8] ss:$16 sps:$4 sm:$0xff]  }
  0x53   :  { %1378 = vmatpush1.bf16.msra.mxu0 %v4748_v23  ;;  %v4840_v23 = vld [vmem:[%s6968_s2 + $0x4cc] ss:$16 sps:$4 sm:$0xff]  }
  0x54   :  { %1460 = vmatpush1.bf16.msra.mxu1 %v4745_v22  ;;  %1379 = vmatprep.subr.bf16.mxu0 %v4756_v25  ;;  %v4835_v22 = vld [vmem:[%s6968_s2 + $0x2a8] ss:$16 sps:$4 sm:$0xff]  }
  0x55   :  { %1461 = vmatprep.subr.bf16.mxu1 %v4753_v24  ;;  %v4838_v24 = vld [vmem:[%s6968_s2 + $0x4c8] ss:$16 sps:$4 sm:$0xff]  }
  0x56   :  { %v4841_v25 = vld [vmem:[%s6968_s2 + $0x288] ss:$16 sps:$4 sm:$0xff]  }
  0x57   :  { %1380 = vmatpush1.bf16.msra.mxu0 %v4754_v27  ;;  %v4844_v27 = vld [vmem:[%s6968_s2 + $0x4a8] ss:$16 sps:$4 sm:$0xff]  }
  0x58   :  { %1462 = vmatpush1.bf16.msra.mxu1 %v4751_v26  ;;  %1381 = vmatprep.subr.bf16.mxu0 %v4762_v29  ;;  %v4846_v26 = vld [vmem:[%s6968_s2 + $0x4ac] ss:$16 sps:$4 sm:$0xff]  }
  0x59   :  { %1463 = vmatprep.subr.bf16.mxu1 %v4759_v28  ;;  %v4847_v28 = vld [vmem:[%s6968_s2 + $0x268] ss:$16 sps:$4 sm:$0xff]   ;;  %v4852_v29 = vld [vmem:[%s6968_s2 + $0x48c] ss:$16 sps:$4 sm:$0xff]  }
  0x5b   :  { %1382 = vmatpush1.bf16.msra.mxu0 %v4760_v31  ;;  %v4850_v31 = vld [vmem:[%s6968_s2 + $0x488] ss:$16 sps:$4 sm:$0xff]  }
  0x5c   :  { %1464 = vmatpush1.bf16.msra.mxu1 %v4757_v30  ;;  %1383 = vmatprep.subr.bf16.mxu0 %v4768_v34  ;;  %v4855_v30 = vld [vmem:[%s6968_s2 + $0x24c] ss:$16 sps:$4 sm:$0xff]  }
  0x5d   :  { %1465 = vmatprep.subr.bf16.mxu1 %v4765_v32  ;;  %v4853_v32 = vld [vmem:[%s6968_s2 + $0x248] ss:$16 sps:$4 sm:$0xff]   ;;  %v4861_v34 = vld [vmem:[%s6968_s2 + $0x22c] ss:$16 sps:$4 sm:$0xff]  }
  0x5f   :  { %1384 = vmatpush1.bf16.msra.mxu0 %v4766_v36  ;;  %v4859_v36 = vld [vmem:[%s6968_s2 + $0x228] ss:$16 sps:$4 sm:$0xff]  }
  0x60   :  { %1466 = vmatpush1.bf16.msra.mxu1 %v4763_v35  ;;  %1385 = vmatprep.subr.bf16.mxu0 %v4774_v38  ;;  %v4856_v35 = vld [vmem:[%s6968_s2 + $0x468] ss:$16 sps:$4 sm:$0xff]   ;;  %v4867_v38 = vld [vmem:[%s6968_s2 + $0x20c] ss:$16 sps:$4 sm:$0xff]  }
  0x61   :  { %1467 = vmatprep.subr.bf16.mxu1 %v4771_v37  ;;  %v4864_v37 = vld [vmem:[%s6968_s2 + $0x44c] ss:$16 sps:$4 sm:$0xff]  }
  0x63   :  { %1386 = vmatpush2.bf16.msra.mxu0 %v4772_v40  ;;  %v4865_v40 = vld [vmem:[%s6968_s2 + $0x208] ss:$16 sps:$4 sm:$0xff]  }
  0x64   :  { %1468 = vmatpush1.bf16.msra.mxu1 %v4769_v39  ;;  %1387 = vmatprep.subr.bf16.mxu0 %v4780_v42  ;;  %v4862_v39 = vld [vmem:[%s6968_s2 + $0x448] ss:$16 sps:$4 sm:$0xff]   ;;  %v4873_v42 = vld [vmem:[%s6968_s2 + $0x3ec] ss:$16 sps:$4 sm:$0xff]  }
  0x65   :  { %1469 = vmatprep.subr.bf16.mxu1 %v4777_v41  ;;  %v4870_v41 = vld [vmem:[%s6968_s2 + $0x42c] ss:$16 sps:$4 sm:$0xff]  }
  0x67   :  { %1388 = vmatpush2.bf16.msra.mxu0 %v4778_v44  ;;  %v4871_v44 = vld [vmem:[%s6968_s2 + $0x3e8] ss:$16 sps:$4 sm:$0xff]  }
  0x68   :  { %1470 = vmatpush1.bf16.msra.mxu1 %v4775_v43  ;;  %1389 = vmatprep.subr.bf16.mxu0 %v4786_v46  ;;  %v4868_v43 = vld [vmem:[%s6968_s2 + $0x428] ss:$16 sps:$4 sm:$0xff]   ;;  %v4879_v46 = vld [vmem:[%s6968_s2 + $0x3cc] ss:$16 sps:$4 sm:$0xff]  }
  0x69   :  { %1471 = vmatprep.subr.bf16.mxu1 %v4783_v45  ;;  %v4876_v45 = vld [vmem:[%s6968_s2 + $0x40c] ss:$16 sps:$4 sm:$0xff]  }
  0x6b   :  { %1390 = vmatpush2.bf16.msra.mxu0 %v4784_v48  ;;  %v4877_v48 = vld [vmem:[%s6968_s2 + $0x3c8] ss:$16 sps:$4 sm:$0xff]  }
  0x6c   :  { %1472 = vmatpush2.bf16.msra.mxu1 %v4781_v47  ;;  %1391 = vmatprep.subr.bf16.mxu0 %v4792_v50  ;;  %v4874_v47 = vld [vmem:[%s6968_s2 + $0x408] ss:$16 sps:$4 sm:$0xff]   ;;  %v4885_v50 = vld [vmem:[%s6968_s2 + $0x3ac] ss:$16 sps:$4 sm:$0xff]  }
  0x6d   :  { %1473 = vmatprep.subr.bf16.mxu1 %v4789_v49  ;;  %v4882_v49 = vld [vmem:[%s6968_s2 + $0x5ec] ss:$16 sps:$4 sm:$0xff]  }
  0x6f   :  { %1392 = vmatpush2.bf16.msra.mxu0 %v4790_v53  ;;  %v4883_v53 = vld [vmem:[%s6968_s2 + $0x3a8] ss:$16 sps:$4 sm:$0xff]  }
  0x70   :  { %1474 = vmatpush2.bf16.msra.mxu1 %v4787_v52  ;;  %1393 = vmatprep.subr.bf16.mxu0 %v4798_v55  ;;  %v4880_v52 = vld [vmem:[%s6968_s2 + $0x5e8] ss:$16 sps:$4 sm:$0xff]   ;;  %v4891_v55 = vld [vmem:[%s6968_s2 + $0x38c] ss:$16 sps:$4 sm:$0xff]  }
  0x71   :  { %1475 = vmatprep.subr.bf16.mxu1 %v4795_v54  ;;  %v4888_v54 = vld [vmem:[%s6968_s2 + $0x5cc] ss:$16 sps:$4 sm:$0xff]  }
  0x73   :  { %1394 = vmatpush2.bf16.msra.mxu0 %v4796_v57  ;;  %v4889_v57 = vld [vmem:[%s6968_s2 + $0x388] ss:$16 sps:$4 sm:$0xff]  }
  0x74   :  { %1476 = vmatpush2.bf16.msra.mxu1 %v4793_v56  ;;  %1395 = vmatprep.subr.bf16.mxu0 %v4804_v59  ;;  %v4886_v56 = vld [vmem:[%s6968_s2 + $0x5c8] ss:$16 sps:$4 sm:$0xff]   ;;  %v4897_v59 = vld [vmem:[%s6968_s2 + $0x36c] ss:$16 sps:$4 sm:$0xff]  }
  0x75   :  { %1477 = vmatprep.subr.bf16.mxu1 %v4801_v58  ;;  %v4894_v58 = vld [vmem:[%s6968_s2 + $0x5ac] ss:$16 sps:$4 sm:$0xff]  }
  0x77   :  { %1396 = vmatpush2.bf16.msra.mxu0 %v4802_v61  ;;  %v4895_v61 = vld [vmem:[%s6968_s2 + $0x368] ss:$16 sps:$4 sm:$0xff]  }
  0x78   :  { %1478 = vmatpush2.bf16.msra.mxu1 %v4799_v60  ;;  %1397 = vmatprep.subr.bf16.mxu0 %v4810_v63  ;;  %v4892_v60 = vld [vmem:[%s6968_s2 + $0x5a8] ss:$16 sps:$4 sm:$0xff]   ;;  %v4903_v63 = vld [vmem:[%s6968_s2 + $0x34c] ss:$16 sps:$4 sm:$0xff]  }
  0x79   :  { %1479 = vmatprep.subr.bf16.mxu1 %v4807_v62  ;;  %v4900_v62 = vld [vmem:[%s6968_s2 + $0x58c] ss:$16 sps:$4 sm:$0xff]  }
  0x7b   :  { %1398 = vmatpush2.bf16.msra.mxu0 %v4808_v1  ;;  %v4901_v1 = vld [vmem:[%s6968_s2 + $0x348] ss:$16 sps:$4 sm:$0xff]  }
  0x7c   :  { %1480 = vmatpush2.bf16.msra.mxu1 %v4805_v0  ;;  %1399 = vmatprep.subr.bf16.mxu0 %v4816_v3  ;;  %v4898_v0 = vld [vmem:[%s6968_s2 + $0x588] ss:$16 sps:$4 sm:$0xff]   ;;  %v4909_v3 = vld [vmem:[%s6968_s2 + $0x32c] ss:$16 sps:$4 sm:$0xff]  }
  0x7d   :  { %1481 = vmatprep.subr.bf16.mxu1 %v4813_v2  ;;  %v4906_v2 = vld [vmem:[%s6968_s2 + $0x56c] ss:$16 sps:$4 sm:$0xff]  }
  0x7f   :  { %1400 = vmatpush2.bf16.msra.mxu0 %v4814_v7  ;;  %v4907_v7 = vld [vmem:[%s6968_s2 + $0x328] ss:$16 sps:$4 sm:$0xff]  }
  0x80   :  { %1482 = vmatpush2.bf16.msra.mxu1 %v4811_v6  ;;  %1498 = vmatprep.subr.bf16.mxu0 %v4825_v9  ;;  %v4904_v6 = vld [vmem:[%s6968_s2 + $0x568] ss:$16 sps:$4 sm:$0xff]   ;;  %v4915_v9 = vld [vmem:[%s6968_s2 + $0x30c] ss:$16 sps:$4 sm:$0xff]  }
  0x81   :  { %1483 = vmatprep.subr.bf16.mxu1 %v4822_v8  ;;  %v4912_v8 = vld [vmem:[%s6968_s2 + $0x54c] ss:$16 sps:$4 sm:$0xff]  }
  0x82   :  { %1402 = vmatmul.mubr.bf16.vlgmr.msra.gmra.mxu0 %v5835_v10 }
  0x83   :  { %1499 = vmatpush1.bf16.msra.mxu0 %v4823_v13  ;;  %1530 = vmatprep.mubr.bf16.mxu0 %v5567_v51  ;;  %v4843_v51 = vld [vmem:[%s6968_s2 + $0x28c] ss:$16 sps:$4 sm:$0xff]   ;;  %v4913_v13 = vld [vmem:[%s6968_s2 + $0x308] ss:$16 sps:$4 sm:$0xff]  }
  0x84   :  { %1484 = vmatpush2.bf16.msra.mxu1 %v4820_v12  ;;  %1500 = vmatprep.subr.bf16.mxu0 %v4831_v16  ;;  %v4910_v12 = vld [vmem:[%s6968_s2 + $0x548] ss:$16 sps:$4 sm:$0xff]   ;;  %v4921_v16 = vld [vmem:[%s6968_s2 + $0x60c] ss:$16 sps:$4 sm:$0xff]  }
  0x85   :  { %1485 = vmatprep.subr.bf16.mxu1 %v4828_v15  ;;  %v4918_v15 = vld [vmem:[%s6968_s2 + $0x52c] ss:$16 sps:$4 sm:$0xff]  }
  0x87   :  { %1501 = vmatpush1.bf16.msra.mxu0 %v4829_v18  ;;  %v4919_v18 = vld [vmem:[%s6968_s2 + $0x608] ss:$16 sps:$4 sm:$0xff]  }
  0x88   :  { %1486 = vmatpush2.bf16.msra.mxu1 %v4826_v17  ;;  %1502 = vmatprep.subr.bf16.mxu0 %v4837_v20  ;;  %v4916_v17 = vld [vmem:[%s6968_s2 + $0x528] ss:$16 sps:$4 sm:$0xff]  }
  0x89   :  { %1541 = vmatprep.subr.bf16.mxu1 %v4834_v19  ;;  %v4924_v19 = vld [vmem:[%s6968_s2 + $0x50c] ss:$16 sps:$4 sm:$0xff]  }
  0x8a   :  { %v4925_v20 = vld [vmem:[%s6970_s4 + $0x78] sm:$0xff]  }
  0x8b   :  { %1488 = vmatmul.mubr.bf16.vlgmr.msra.gmra.mxu1 %v5622_v4  ;;  %1503 = vmatpush1.bf16.msra.mxu0 %v4835_v22  ;;  %v4849_v4 = vld [vmem:[%s6968_s2 + $0x26c] ss:$16 sps:$4 sm:$0xff]  }
  0x8c   :  { %1542 = vmatpush1.bf16.msra.mxu1 %v4832_v21  ;;  %1504 = vmatprep.subr.bf16.mxu0 %v4843_v51  ;;  %v4922_v21 = vld [vmem:[%s6968_s2 + $0x508] ss:$16 sps:$4 sm:$0xff]  }
  0x8d   :  { %1543 = vmatprep.subr.bf16.mxu1 %v4840_v23  ;;  %1573 = vmatprep.mubr.bf16.mxu1 %v5718_v33  ;;  %v4858_v33 = vld [vmem:[%s6968_s2 + $0x46c] ss:$16 sps:$4 sm:$0xff]   ;;  %v4927_v23 = vld [vmem:[%s6970_s4 + $0x70] sm:$0xff]  }
  0x8e   :  { %v4926_v22 = vld [vmem:[%s6970_s4 + $0x38] sm:$0xff]   ;;  %v4929_v51 = vld [vmem:[%s6970_s4 + $0x68] sm:$0xff]  }
  0x8f   :  { %1505 = vmatpush1.bf16.msra.mxu0 %v4841_v25  ;;  %v4942_v25 = vld [vmem:[%s6970_s4 + $0xb8] sm:$0xff]  }
  0x90   :  { %1544 = vmatpush1.bf16.msra.mxu1 %v4838_v24  ;;  %1506 = vmatprep.subr.bf16.mxu0 %v4849_v4  ;;  %v4930_v24 = vld [vmem:[%s6970_s4 + $0x28] sm:$0xff]   ;;  %v4932_v4 = vld [vmem:[%s6970_s4 + $0x20] sm:$0xff]  }
  0x91   :  { %1545 = vmatprep.subr.bf16.mxu1 %v4846_v26  ;;  %v4943_v26 = vld [vmem:[%s6970_s4 + $0xf0] sm:$0xff]  }
  0x93   :  { %1507 = vmatpush1.bf16.msra.mxu0 %v4847_v28  ;;  %v4944_v28 = vld [vmem:[%s6970_s4 + $0xb0] sm:$0xff]  }
  0x94   :  { %1546 = vmatpush1.bf16.msra.mxu1 %v4844_v27  ;;  %1508 = vmatprep.subr.bf16.mxu0 %v4855_v30  ;;  %v4933_v27 = vld [vmem:[%s6970_s4 + $0x58] sm:$0xff]  }
  0x95   :  { %1547 = vmatprep.subr.bf16.mxu1 %v4852_v29  ;;  %v4945_v29 = vld [vmem:[%s6970_s4 + $0xe8] sm:$0xff]   ;;  %v4934_v30 = vld [vmem:[%s6970_s4 + $0x18] sm:$0xff]  }
  0x97   :  { %1509 = vmatpush1.bf16.msra.mxu0 %v4853_v32  ;;  %v4936_v32 = vld [vmem:[%s6970_s4 + $0x10] sm:$0xff]  }
  0x98   :  { %1548 = vmatpush1.bf16.msra.mxu1 %v4850_v31  ;;  %1510 = vmatprep.subr.bf16.mxu0 %v4861_v34  ;;  %v4935_v31 = vld [vmem:[%s6970_s4 + $0x50] sm:$0xff]   ;;  %v4938_v34 = vld [vmem:[%s6970_s4 + $0x8] sm:$0xff]  }
  0x99   :  { %1549 = vmatprep.subr.bf16.mxu1 %v4858_v33  ;;  %v4937_v33 = vld [vmem:[%s6970_s4 + $0x48] sm:$0xff]  }
  0x9b   :  { %1511 = vmatpush1.bf16.msra.mxu0 %v4859_v36  ;;  %v4940_v36 = vld [vmem:[%s6970_s4] sm:$0xff]  }
  0x9c   :  { %1550 = vmatpush1.bf16.msra.mxu1 %v4856_v35  ;;  %1512 = vmatprep.subr.bf16.mxu0 %v4867_v38  ;;  %v4939_v35 = vld [vmem:[%s6970_s4 + $0x40] sm:$0xff]  }
  0x9d   :  { %1551 = vmatprep.subr.bf16.mxu1 %v4864_v37  ;;  %v4946_v37 = vld [vmem:[%s6970_s4 + $0xa8] sm:$0xff]   ;;  %v4947_v38 = vld [vmem:[%s6970_s4 + $0xe0] sm:$0xff]  }
  0x9f   :  { %1513 = vmatpush1.bf16.msra.mxu0 %v4865_v40  ;;  %v4949_v40 = vld [vmem:[%s6970_s4 + $0xd8] sm:$0xff]  }
  0xa0   :  { %1552 = vmatpush1.bf16.msra.mxu1 %v4862_v39  ;;  %1514 = vmatprep.subr.bf16.mxu0 %v4873_v42  ;;  %v4948_v39 = vld [vmem:[%s6970_s4 + $0xa0] sm:$0xff]   ;;  %v4951_v42 = vld [vmem:[%s6970_s4 + $0xd0] sm:$0xff]  }
  0xa1   :  { %1553 = vmatprep.subr.bf16.mxu1 %v4870_v41  ;;  %v4950_v41 = vld [vmem:[%s6970_s4 + $0x98] sm:$0xff]  }
  0xa3   :  { %1515 = vmatpush2.bf16.msra.mxu0 %v4871_v44  ;;  %v4953_v44 = vld [vmem:[%s6970_s4 + $0xc8] sm:$0xff]  }
  0xa4   :  { %1554 = vmatpush1.bf16.msra.mxu1 %v4868_v43  ;;  %1516 = vmatprep.subr.bf16.mxu0 %v4879_v46  ;;  %v4952_v43 = vld [vmem:[%s6970_s4 + $0x90] sm:$0xff]   ;;  %v4955_v46 = vld [vmem:[%s6970_s4 + $0xc0] sm:$0xff]  }
  0xa5   :  { %1555 = vmatprep.subr.bf16.mxu1 %v4876_v45  ;;  %v4954_v45 = vld [vmem:[%s6970_s4 + $0x88] sm:$0xff]  }
  0xa7   :  { %1517 = vmatpush2.bf16.msra.mxu0 %v4877_v48 }
  0xa8   :  { %1556 = vmatpush1.bf16.msra.mxu1 %v4874_v47  ;;  %1518 = vmatprep.subr.bf16.mxu0 %v4885_v50  ;;  %v4956_v47 = vld [vmem:[%s6970_s4 + $0x80] sm:$0xff]  }
  0xa9   :  { %1557 = vmatprep.subr.bf16.mxu1 %v4882_v49  ;;  %v244_v49 = vlaneseq }
  0xab   :  { %1519 = vmatpush2.bf16.msra.mxu0 %v4883_v53 }
  0xac   :  { %1558 = vmatpush2.bf16.msra.mxu1 %v4880_v52  ;;  %1520 = vmatprep.subr.bf16.mxu0 %v4891_v55  ;;  %v6146_v52 = vshrl.u32 %v244_v49, 7 }
  0xad   :  { %1559 = vmatprep.subr.bf16.mxu1 %v4888_v54 }
  0xae   :  { %v6149_v55 = vsub.s32 1, %v6146_v52 }
  0xaf   :  { %1521 = vmatpush2.bf16.msra.mxu0 %v4889_v57 }
  0xb0   :  { %1560 = vmatpush2.bf16.msra.mxu1 %v4886_v56  ;;  %1522 = vmatprep.subr.bf16.mxu0 %v4897_v59  ;;  %v6152_v56 = vsub.s32 0, %v6146_v52 }
  0xb1   :  { %1561 = vmatprep.subr.bf16.mxu1 %v4894_v58  ;;  %v242_v58 = vld [vmem:[%s6971_s3] sm:$0xf] }
  0xb3   :  { %1523 = vmatpush2.bf16.msra.mxu0 %v4895_v61  ;;  %v247_v61 = vrot.slane %v242_v58, %v6152_v56 }
  0xb4   :  { %1562 = vmatpush2.bf16.msra.mxu1 %v4892_v60  ;;  %1524 = vmatprep.subr.bf16.mxu0 %v4903_v63  ;;  %v251_v60 = vrot.slane %v242_v58, %v6149_v55 }
  0xb5   :  { %1563 = vmatprep.subr.bf16.mxu1 %v4900_v62 }
  0xb7   :  { %1525 = vmatpush2.bf16.msra.mxu0 %v4901_v1 }
  0xb8   :  { %1564 = vmatpush2.bf16.msra.mxu1 %v4898_v0  ;;  %1526 = vmatprep.subr.bf16.mxu0 %v4909_v3 }
  0xb9   :  { %1565 = vmatprep.subr.bf16.mxu1 %v4906_v2 }
  0xbb   :  { %1527 = vmatpush2.bf16.msra.mxu0 %v4907_v7 }
  0xbc   :  { %1566 = vmatpush2.bf16.msra.mxu1 %v4904_v6  ;;  %1528 = vmatprep.subr.bf16.mxu0 %v4915_v9 }
  0xbd   :  { %1567 = vmatprep.subr.bf16.mxu1 %v4912_v8 }
  0xbf   :  { %1529 = vmatpush2.bf16.msra.mxu0 %v4913_v13 }
  0xc0   :  { %1568 = vmatpush2.bf16.msra.mxu1 %v4910_v12  ;;  %1598 = vmatprep.subr.bf16.mxu0 %v4921_v16 }
  0xc1   :  { %1569 = vmatprep.subr.bf16.mxu1 %v4918_v15 }
  0xc2   :  { %1531 = vmatmul.mubr.bf16.vlgmr.msra.gmra.mxu0 %v5627_v5  ;;  %v4928_v5 = vld [vmem:[%s6970_s4 + $0x30] sm:$0xff]  }
  0xc3   :  { %1599 = vmatpush1.bf16.msra.mxu0 %v4919_v18  ;;  %1616 = vmatprep.mubr.bf16.mxu0 %v5347_v11 }
  0xc4   :  { %1570 = vmatpush2.bf16.msra.mxu1 %v4916_v17  ;;  %4531 = vmatprep.subr.bf16.mxu0 %v4925_v20 }
  0xc5   :  { %1571 = vmatprep.subr.bf16.mxu1 %v4924_v19 }
  0xc8   :  { %1572 = vmatpush2.bf16.msra.mxu1 %v4922_v21 }
  0xca   :  { %4261 = vmatmul.mubr.msk.bf16.vlgmr.msra.gmra.mxu0 %vm1279_vm0, %v5656_v14  ;;  %v4931_v14 = vld [vmem:[%s6970_s4 + $0x60] sm:$0xff]  }
  0xcb   :  { %1574 = vmatmul.mubr.bf16.vlgmr.msra.gmra.mxu1 %v5835_v10  ;;  %4532 = vmatpush3.bf16.msra.mxu0 %v4926_v22  ;;  %v4941_v10 = vld [vmem:[%s6970_s4 + $0xf8] sm:$0xff]  }
  0xcc   :  { %4533 = vmatprep.subr.bf16.mxu0 %v4927_v23  ;;  %4553 = vmatprep.subr.bf16.mxu1 %v4941_v10 }
  0xcd   :  { %4554 = vmatpush3.bf16.msra.mxu1 %v4942_v25 }
  0xce   :  { %4555 = vmatprep.subr.bf16.mxu1 %v4943_v26 }
  0xcf   :  { %4534 = vmatpush3.bf16.msra.mxu0 %v4928_v5 }
  0xd0   :  { %4535 = vmatprep.subr.bf16.mxu0 %v4929_v51 }
  0xd1   :  { %4556 = vmatpush3.bf16.msra.mxu1 %v4944_v28 }
  0xd2   :  { %4557 = vmatprep.subr.bf16.mxu1 %v4945_v29 }
  0xd3   :  { %4536 = vmatpush3.bf16.msra.mxu0 %v4930_v24 }
  0xd4   :  { %4537 = vmatprep.subr.bf16.mxu0 %v4931_v14 }
  0xd5   :  { %4558 = vmatpush3.bf16.msra.mxu1 %v4946_v37 }
  0xd6   :  { %4559 = vmatprep.subr.bf16.mxu1 %v4947_v38 }
  0xd7   :  { %4538 = vmatpush3.bf16.msra.mxu0 %v4932_v4 }
  0xd8   :  { %4539 = vmatprep.subr.bf16.mxu0 %v4933_v27 }
  0xd9   :  { %4560 = vmatpush3.bf16.msra.mxu1 %v4948_v39 }
  0xda   :  { %4561 = vmatprep.subr.bf16.mxu1 %v4949_v40 }
  0xdb   :  { %4540 = vmatpush3.bf16.msra.mxu0 %v4934_v30 }
  0xdc   :  { %4541 = vmatprep.subr.bf16.mxu0 %v4935_v31 }
  0xdd   :  { %4562 = vmatpush3.bf16.msra.mxu1 %v4950_v41 }
  0xde   :  { %4563 = vmatprep.subr.bf16.mxu1 %v4951_v42 }
  0xdf   :  { %4542 = vmatpush3.bf16.msra.mxu0 %v4936_v32  ;;  %v6161_v32 = vsub.s32 3, %v6146_v52 }
  0xe0   :  { %4543 = vmatprep.subr.bf16.mxu0 %v4937_v33  ;;  %v6164_v33 = vsub.s32 2, %v6146_v52 }
  0xe1   :  { %4564 = vmatpush3.bf16.msra.mxu1 %v4952_v43  ;;  %v259_v37 = vrot.slane %v242_v58, %v6161_v32 }
  0xe2   :  { %4565 = vmatprep.subr.bf16.mxu1 %v4953_v44  ;;  %v255_v38 = vrot.slane %v242_v58, %v6164_v33 }
  0xe3   :  { %4544 = vmatpush3.bf16.msra.mxu0 %v4938_v34 }
  0xe4   :  { %4545 = vmatprep.subr.bf16.mxu0 %v4939_v35 }
  0xe5   :  { %4566 = vmatpush3.bf16.msra.mxu1 %v4954_v45 }
  0xe6   :  { %4567 = vmatprep.subr.bf16.mxu1 %v4955_v46 }
  0xe7   :  { %4546 = vmatpush3.bf16.msra.mxu0 %v4940_v36 }
  0xe9   :  { %4568 = vmatpush3.bf16.msra.mxu1 %v4956_v47 }
 0x102   :  { %v1317_v53 = vpop.f32.mrf.mxu0 }
 0x103   :  { %v1360_v48 = vpop.f32.mrf.mxu1  ;;  %v1318_v1 = vadd.f32 %v1317_v53, %v247_v61 }
 0x104   :  { %v1319_v57 = vpop.f32.mrf.mxu0 }
 0x105   :  { %v1362_v50 = vpop.f32.mrf.mxu1  ;;  %v1320_v0 = vadd.f32 %v1319_v57, %v251_v60  ;;  %v1361_v12 = vadd.f32 %v1360_v48, %v1318_v1 }
 0x106   :  { %v1321_v62 = vpop.f32.mrf.mxu0 }
 0x107   :  { %v1364_v54 = vpop.f32.mrf.mxu1  ;;  %v1322_v3 = vadd.f32 %v1321_v62, %v247_v61  ;;  %v1363_v8 = vadd.f32 %v1362_v50, %v1320_v0 }
 0x108   :  { %v1323_v2 = vpop.f32.mrf.mxu0 }
 0x109   :  { %v1366_v59 = vpop.f32.mrf.mxu1  ;;  %v1324_v9 = vadd.f32 %v1323_v2, %v251_v60  ;;  %v1365_v15 = vadd.f32 %v1364_v54, %v1322_v3 }
 0x10b   :  { %v1446_v63 = vpop.f32.mrf.mxu1  ;;  %v1367_v20 = vadd.f32 %v1366_v59, %v1324_v9 }
 0x10d   :  { %v1448_v6 = vpop.f32.mrf.mxu1 }
 0x10f   :  { %v1450_v17 = vpop.f32.mrf.mxu1 }
 0x111   :  { %v1452_v24 = vpop.f32.mrf.mxu1 }
 0x142   :  { %v1403_v7 = vpop.f32.mrf.mxu0 }
 0x143   :  { %v1404_v18 = vadd.f32 %v1403_v7, %v1361_v12 }
 0x144   :  { %v1405_v13 = vpop.f32.mrf.mxu0 }
 0x145   :  { %v1406_v16 = vadd.f32 %v1405_v13, %v1363_v8  ;;  %v1447_v14 = vadd.f32 %v1446_v63, %v1404_v18 }
 0x146   :  { %v1407_v19 = vpop.f32.mrf.mxu0 }
 0x147   :  { %v1408_v21 = vadd.f32 %v1407_v19, %v1365_v15  ;;  %v1449_v23 = vadd.f32 %v1448_v6, %v1406_v16  ;;  %v1627_v27 = vmax.f32 %v1447_v14, 0.0 }
 0x148   :  { %v1409_v22 = vpop.f32.mrf.mxu0 }
 0x149   :  { %v1451_v5 = vadd.f32 %v1450_v17, %v1408_v21  ;;  %v1410_v51 = vadd.f32 %v1409_v22, %v1367_v20  ;;  %v1628_v26 = vmax.f32 %v1449_v23, 0.0  ;;  %v4262_v21 = vld [vmem:[%s6972_s5] ss:$0 sm:$0xff] }
 0x14b   :  { %v1453_v10 = vadd.f32 %v1452_v24, %v1410_v51  ;;  %v1631_v25 = vmax.f32 %v1451_v5, 0.0  ;;  %v1489_v30 = vpop.f32.mrf.mxu1 }
 0x14c   :  { %v1490_v43 = vadd.f32 %v1489_v30, %v255_v38 }
 0x14d   :  { %v1632_v4 = vmax.f32 %v1453_v10, 0.0  ;;  %v1635_v29 = vpack.c.bf16 %v1631_v25, %v1627_v27  ;;  %v1491_v31 = vpop.f32.mrf.mxu1 }
 0x14e   :  { %v1492_v42 = vadd.f32 %v1491_v31, %v259_v37  ;;  %v2009_v31 = vld [vmem:[%s6974_s6 + $0x20] sm:$0x33] }
 0x14f   :  { %v1636_v28 = vpack.c.bf16 %v1632_v4, %v1628_v26  ;;  %v1493_v35 = vpop.f32.mrf.mxu1 }
 0x150   :  { %v1494_v46 = vadd.f32 %v1493_v35, %v255_v38  ;;  %v4300_v35 = vcombine.high %v2009_v31, %v2009_v31 }
 0x151   :  { %1934 = vmatprep.mubr.bf16.mxu0 %v1636_v28  ;;  %v1495_v40 = vpop.f32.mrf.mxu1 }
 0x152   :  { %1935 = vmatmul.mubr.bf16.vlgmr.msra.gmra.mxu0 %v1635_v29  ;;  %v1496_v53 = vadd.f32 %v1495_v40, %v259_v37  ;;  %v4299_v37 = vcombine.low %v2009_v31, %v2009_v31  ;;  %4303 = vmatprep.subr.msk.bf16.mxu0 %vm2067_vm1, %v4300_v35  ;;  %v5018_v31 = vld [vmem:[%s6975_s8 + $0x6c8] ss:$28 sps:$4 sm:$0xff]   ;;  %v5026_v35 = vld [vmem:[%s6975_s8 + $0x694] ss:$28 sps:$4 sm:$0xff]  }
 0x153   :  { %2112 = vmatprep.mubr.bf16.mxu0 %v5347_v11 }
 0x154   :  { %v2069_v40 = vsel %vm2067_vm1, %v4299_v37, 0  ;;  %v5024_v37 = vld [vmem:[%s6975_s8 + $0x690] ss:$28 sps:$4 sm:$0xff]  }
 0x155   :  { %2093 = vmatpush1.bf16.msra.mxu0 %v2069_v40  ;;  %v5027_v40 = vld [vmem:[%s6975_s8 + $0x2d8] ss:$28 sps:$4 sm:$0xff]  }
 0x182   :  { %v1532_v34 = vpop.f32.mrf.mxu0 }
 0x183   :  { %v1533_v48 = vadd.f32 %v1532_v34, %v1490_v43  ;;  %v2010_v34 = vld [vmem:[%s6974_s6 + $0x28] sm:$0x33] }
 0x184   :  { %v1534_v36 = vpop.f32.mrf.mxu0  ;;  %v4301_v38 = vcombine.low %v2010_v34, %v2010_v34  ;;  %v4966_v43 = vld [vmem:[%s6974_s6 + $0xc] ss:$16 sps:$4 sm:$0xff]  }
 0x185   :  { %v1535_v47 = vadd.f32 %v1534_v36, %v1492_v42  ;;  %v4302_v36 = vcombine.high %v2010_v34, %v2010_v34  ;;  %v4963_v42 = vld [vmem:[%s6974_s6 + $0x4] ss:$16 sps:$4 sm:$0xff]  }
 0x186   :  { %v1536_v39 = vpop.f32.mrf.mxu0  ;;  %2094 = vmatprep.subr.bf16.mxu0 %v4963_v42  ;;  %v5023_v34 = vld [vmem:[%s6975_s8 + $0x314] ss:$28 sps:$4 sm:$0xff]   ;;  %v5035_v42 = vld [vmem:[%s6975_s8 + $0x2a4] ss:$28 sps:$4 sm:$0xff]  }
 0x187   :  { %v1537_v54 = vadd.f32 %v1536_v39, %v1494_v46  ;;  %4305 = vmatprep.subr.msk.bf16.mxu1 %vm2067_vm1, %v4302_v36  ;;  %v5021_v36 = vld [vmem:[%s6975_s8 + $0x310] ss:$28 sps:$4 sm:$0xff]  }
 0x188   :  { %v1538_v41 = vpop.f32.mrf.mxu0 }
 0x189   :  { %v1539_v62 = vadd.f32 %v1538_v41, %v1496_v53  ;;  %v2075_v41 = vsel %vm2067_vm1, %v4301_v38, 0  ;;  %v5029_v38 = vld [vmem:[%s6975_s8 + $0x2dc] ss:$28 sps:$4 sm:$0xff]  }
 0x18a   :  { %v1618_v45 = vpop.f32.mrf.mxu0 }
 0x18b   :  { %v1575_v44 = vpop.f32.mrf.mxu1 }
 0x18c   :  { %v1620_v50 = vpop.f32.mrf.mxu0  ;;  %v1576_v59 = vadd.f32 %v1575_v44, %v1533_v48  ;;  %v4961_v44 = vld [vmem:[%s6974_s6] ss:$16 sps:$4 sm:$0xff]   ;;  %v4972_v48 = vld [vmem:[%s6975_s8 + $0x50c] ss:$28 sps:$4 sm:$0xff]  }
 0x18d   :  { %v1577_v49 = vpop.f32.mrf.mxu1  ;;  %2095 = vmatpush1.bf16.msra.mxu0 %v4961_v44  ;;  %v5033_v44 = vld [vmem:[%s6975_s8 + $0x2a0] ss:$28 sps:$4 sm:$0xff]  }
 0x18e   :  { %v1578_v57 = vadd.f32 %v1577_v49, %v1535_v47  ;;  %v1622_v61 = vpop.f32.mrf.mxu0  ;;  %v1619_v6 = vadd.f32 %v1618_v45, %v1576_v59  ;;  %v4964_v45 = vld [vmem:[%s6974_s6 + $0x8] ss:$16 sps:$4 sm:$0xff]  }
 0x18f   :  { %v1579_v60 = vpop.f32.mrf.mxu1  ;;  %v4969_v47 = vld [vmem:[%s6975_s8 + $0x18c] ss:$28 sps:$4 sm:$0xff]  }
 0x190   :  { %v1580_v58 = vadd.f32 %v1579_v60, %v1537_v54  ;;  %v1624_v0 = vpop.f32.mrf.mxu0  ;;  %v1621_v1 = vadd.f32 %v1620_v50, %v1578_v57  ;;  %v1629_v13 = vmax.f32 %v1619_v6, 0.0  ;;  %3623 = vmatprep.subr.bf16.mxu0 %v4969_v47  ;;  %v1984_v50 = vld [vmem:[%s6976_s1] sm:$0xff]  ;;  %v1985_v54 = vld [vmem:[%s6976_s1 + $0x8] sm:$0xff] }
 0x191   :  { %v1581_v63 = vpop.f32.mrf.mxu1  ;;  %v4976_v6 = vld [vmem:[%s6975_s8 + $0x4d0] ss:$28 sps:$4 sm:$0xff]  }
 0x192   :  { %v1623_v2 = vadd.f32 %v1622_v61, %v1580_v58  ;;  %v1582_v3 = vadd.f32 %v1581_v63, %v1539_v62  ;;  %v1630_v9 = vmax.f32 %v1621_v1, 0.0  ;;  %v4967_v58 = vld [vmem:[%s6975_s8 + $0x188] ss:$28 sps:$4 sm:$0xff]   ;;  %v4975_v1 = vld [vmem:[%s6975_s8 + $0x154] ss:$28 sps:$4 sm:$0xff]  }
 0x193   :  { %v4970_v63 = vld [vmem:[%s6975_s8 + $0x508] ss:$28 sps:$4 sm:$0xff]  }
 0x194   :  { %v1625_v7 = vadd.f32 %v1624_v0, %v1582_v3  ;;  %v1633_v8 = vmax.f32 %v1623_v2, 0.0  ;;  %v4978_v2 = vld [vmem:[%s6975_s8 + $0x4d4] ss:$28 sps:$4 sm:$0xff]   ;;  %v5044_v47 = vld [vmem:[%s6975_s8 + $0x5ec] ss:$28 sps:$4 sm:$0xff]  }
 0x195   :  { %v4973_v3 = vld [vmem:[%s6975_s8 + $0x150] ss:$28 sps:$4 sm:$0xff]  }
 0x196   :  { %v1634_v12 = vmax.f32 %v1625_v7, 0.0  ;;  %v1637_v16 = vpack.c.bf16 %v1633_v8, %v1629_v13  ;;  %v4981_v7 = vld [vmem:[%s6975_s8 + $0x11c] ss:$28 sps:$4 sm:$0xff]   ;;  %v4987_v13 = vld [vmem:[%s6975_s8 + $0xe4] ss:$28 sps:$4 sm:$0xff]  }
 0x197   :  { %v4984_v8 = vld [vmem:[%s6975_s8 + $0x49c] ss:$28 sps:$4 sm:$0xff]  }
 0x198   :  { %v1638_v15 = vpack.c.bf16 %v1634_v12, %v1630_v9  ;;  %v4979_v9 = vld [vmem:[%s6975_s8 + $0x118] ss:$28 sps:$4 sm:$0xff]  }
 0x199   :  { %v4982_v12 = vld [vmem:[%s6975_s8 + $0x498] ss:$28 sps:$4 sm:$0xff]  }
 0x19a   :  { %1975 = vmatprep.mubr.bf16.mxu1 %v1638_v15  ;;  %v4990_v15 = vld [vmem:[%s6975_s8 + $0x464] ss:$28 sps:$4 sm:$0xff]  }
 0x19b   :  { %1976 = vmatmul.mubr.bf16.vlgmr.msra.gmra.mxu1 %v1637_v16  ;;  %v4985_v16 = vld [vmem:[%s6975_s8 + $0xe0] ss:$28 sps:$4 sm:$0xff]  }
 0x19c   :  { %2155 = vmatprep.mubr.bf16.mxu1 %v5347_v11  ;;  %2136 = vmatpush1.bf16.msra.mxu1 %v2075_v41  ;;  %v5030_v41 = vld [vmem:[%s6975_s8 + $0x658] ss:$28 sps:$4 sm:$0xff]  }
 0x19d   :  { %2137 = vmatprep.subr.bf16.mxu1 %v4966_v43  ;;  %v5038_v43 = vld [vmem:[%s6975_s8 + $0x624] ss:$28 sps:$4 sm:$0xff]  }
 0x1a0   :  { %2138 = vmatpush1.bf16.msra.mxu1 %v4964_v45  ;;  %v5036_v45 = vld [vmem:[%s6975_s8 + $0x620] ss:$28 sps:$4 sm:$0xff]  }
 0x1a1   :  { %3666 = vmatprep.subr.bf16.mxu1 %v4972_v48  ;;  %v5039_v48 = vld [vmem:[%s6975_s8 + $0x268] ss:$28 sps:$4 sm:$0xff]  }
 0x212   :  { %v4547_v17 = vpop.f32.mrf.mxu0 }
 0x214   :  { %v4548_v18 = vpop.f32.mrf.mxu0 }
 0x215   :  { %v4549_v20 = vadd.f32 %v4548_v18, %v4547_v17  ;;  %v4988_v17 = vld [vmem:[%s6975_s8 + $0x460] ss:$28 sps:$4 sm:$0xff]   ;;  %v4993_v18 = vld [vmem:[%s6975_s8 + $0xac] ss:$28 sps:$4 sm:$0xff]  }
 0x216   :  { %v4550_v19 = vpop.f32.mrf.mxu0 }
 0x217   :  { %v1937_v51 = vadd.f32 %v4549_v20, %v4262_v21  ;;  %v4991_v20 = vld [vmem:[%s6975_s8 + $0xa8] ss:$28 sps:$4 sm:$0xff]  }
 0x218   :  { %v4551_v22 = vpop.f32.mrf.mxu0 }
 0x219   :  { %v4552_v24 = vadd.f32 %v4551_v22, %v4550_v19  ;;  %v4996_v19 = vld [vmem:[%s6975_s8 + $0x42c] ss:$28 sps:$4 sm:$0xff]   ;;  %v4999_v22 = vld [vmem:[%s6975_s8 + $0x74] ss:$28 sps:$4 sm:$0xff]  }
 0x21b   :  { %v1940_v4 = vadd.f32 %v4552_v24, %v4262_v21  ;;  %v4994_v21 = vld [vmem:[%s6975_s8 + $0x428] ss:$28 sps:$4 sm:$0xff]   ;;  %v5005_v24 = vld [vmem:[%s6975_s8 + $0x3c] ss:$28 sps:$4 sm:$0xff]  }
 0x25b   :  { %v4569_v23 = vpop.f32.mrf.mxu1 }
 0x25d   :  { %v4570_v5 = vpop.f32.mrf.mxu1 }
 0x25e   :  { %v4571_v14 = vadd.f32 %v4570_v5, %v4569_v23  ;;  %v5002_v23 = vld [vmem:[%s6975_s8 + $0x3f4] ss:$28 sps:$4 sm:$0xff]  }
 0x25f   :  { %v4572_v10 = vpop.f32.mrf.mxu1  ;;  %v4997_v5 = vld [vmem:[%s6975_s8 + $0x70] ss:$28 sps:$4 sm:$0xff]  }
 0x260   :  { %v1978_v25 = vadd.f32 %v4571_v14, %v1937_v51  ;;  %v5000_v51 = vld [vmem:[%s6975_s8 + $0x3f0] ss:$28 sps:$4 sm:$0xff]   ;;  %v5008_v14 = vld [vmem:[%s6975_s8 + $0x3bc] ss:$28 sps:$4 sm:$0xff]  }
 0x261   :  { %v4573_v26 = vpop.f32.mrf.mxu1 }
 0x262   :  { %v1986_v27 = vmul.f32 0.5, %v1978_v25  ;;  %4047 = vst [vmem:[%s6973_s11] sm:$0xff] %v1978_v25  ;;  %v4574_v11 = vadd.f32 %v4573_v26, %v4572_v10  ;;  %v5003_v10 = vld [vmem:[%s6975_s8 + $0x38] ss:$28 sps:$4 sm:$0xff]   ;;  %v5011_v26 = vld [vmem:[%s6975_s8 + $0x4] ss:$28 sps:$4 sm:$0xff]  }
 0x264   :  { %v1988_v28 = vmul.f32 1.442695, %v1986_v27  ;;  %v1981_v29 = vadd.f32 %v4574_v11, %v1940_v4  ;;  %v5014_v4 = vld [vmem:[%s6975_s8 + $0x384] ss:$28 sps:$4 sm:$0xff]  }
 0x265   :  { %v5009_v27 = vld [vmem:[%s6975_s8] ss:$28 sps:$4 sm:$0xff]  }
 0x266   :  { %5287 = vpow2.f32 %v1988_v28  ;;  %v1987_v30 = vmul.f32 0.5, %v1981_v29  ;;  %4048 = vst [vmem:[%s6973_s11 + $0x8] sm:$0xff] %v1981_v29  ;;  %v5012_v11 = vld [vmem:[%s6975_s8 + $0x380] ss:$28 sps:$4 sm:$0xff]   ;;  %v5017_v28 = vld [vmem:[%s6975_s8 + $0x34c] ss:$28 sps:$4 sm:$0xff]  }
 0x268   :  { %v1990_v39 = vmul.f32 1.442695, %v1987_v30  ;;  %v5015_v30 = vld [vmem:[%s6975_s8 + $0x348] ss:$28 sps:$4 sm:$0xff]  }
 0x26a   :  { %5289 = vpow2.f32 %v1990_v39  ;;  %v5032_v39 = vld [vmem:[%s6975_s8 + $0x65c] ss:$28 sps:$4 sm:$0xff]  }
 0x273   :  { %v5288_v46 = vpop.eup %5287 }
 0x274   :  { %1994 = vrot.lane.b32.xlu0 %v5288_v46, %s5348_s15  ;;  %v5041_v46 = vld [vmem:[%s6975_s8 + $0x26c] ss:$28 sps:$4 sm:$0xff]  }
 0x277   :  { %v5290_v49 = vpop.eup %5289 }
 0x278   :  { %1996 = vrot.lane.b32.xlu0 %v5290_v49, %s5348_s15  ;;  %v5042_v49 = vld [vmem:[%s6975_s8 + $0x5e8] ss:$28 sps:$4 sm:$0xff]  }
 0x2e6   :  { %v1995_v53 = vpop.permute.xlu0 %1994 }
 0x2e7   :  { %v2000_v57 = vmul.f32 %v1995_v53, %v1984_v50  ;;  %v5047_v50 = vld [vmem:[%s6975_s8 + $0x234] ss:$28 sps:$4 sm:$0xff]  }
 0x2e8   :  { %v5050_v53 = vld [vmem:[%s6975_s8 + $0x5b4] ss:$28 sps:$4 sm:$0xff]  }
 0x2e9   :  { %v2002_v61 = vadd.f32 %v2000_v57, %v1978_v25  ;;  %v5006_v25 = vld [vmem:[%s6975_s8 + $0x3b8] ss:$28 sps:$4 sm:$0xff]   ;;  %v5048_v57 = vld [vmem:[%s6975_s8 + $0x5b0] ss:$28 sps:$4 sm:$0xff]  }
 0x2ea   :  { %v1997_v59 = vpop.permute.xlu0 %1996 }
 0x2eb   :  { %v2001_v60 = vmul.f32 %v1997_v59, %v1985_v54  ;;  %v5045_v54 = vld [vmem:[%s6975_s8 + $0x230] ss:$28 sps:$4 sm:$0xff]   ;;  %v5053_v59 = vld [vmem:[%s6975_s8 + $0x1fc] ss:$28 sps:$4 sm:$0xff]  }
 0x2ed   :  { %v2003_v62 = vadd.f32 %v2001_v60, %v1981_v29  ;;  %v5020_v29 = vld [vmem:[%s6975_s8 + $0x6cc] ss:$28 sps:$4 sm:$0xff]   ;;  %v5056_v60 = vld [vmem:[%s6975_s8 + $0x57c] ss:$28 sps:$4 sm:$0xff]  }
 0x2ef   :  { %v2004_v0 = vpack.c.bf16 %v2003_v62, %v2002_v61  ;;  %v5051_v61 = vld [vmem:[%s6975_s8 + $0x1f8] ss:$28 sps:$4 sm:$0xff]  }
 0x2f0   :  { %v5054_v62 = vld [vmem:[%s6975_s8 + $0x578] ss:$28 sps:$4 sm:$0xff]  }
 0x2f1   :  { %4304 = vmatmul.mubr.msk.bf16.vlgmr.msra.gmra.mxu0 %vm2063_vm2, %v2004_v0  ;;  %4306 = vmatmul.mubr.msk.bf16.vlgmr.msra.gmra.mxu1 %vm2063_vm2, %v2004_v0  ;;  %v5057_v0 = vld [vmem:[%s6975_s8 + $0x1c0] ss:$28 sps:$4 sm:$0xff]  }
 0x2f2   :  { %3624 = vmatpush1.bf16.msra.mxu0 %v4967_v58  ;;  %3667 = vmatpush1.bf16.msra.mxu1 %v4970_v63  ;;  %v5059_v58 = vld [vmem:[%s6975_s8 + $0x1c4] ss:$28 sps:$4 sm:$0xff]  }
 0x2f3   :  { %3625 = vmatprep.subr.bf16.mxu0 %v4975_v1  ;;  %3668 = vmatprep.subr.bf16.mxu1 %v4978_v2  ;;  %v5062_v63 = vld [vmem:[%s6975_s8 + $0x544] ss:$28 sps:$4 sm:$0xff]   ;;  %v5065_v2 = vld [vmem:[%s6975_s8 + $0x194] ss:$28 sps:$4 sm:$0xff]  }
 0x2f4   :  { %v5060_v1 = vld [vmem:[%s6975_s8 + $0x540] ss:$28 sps:$4 sm:$0xff]  }
 0x2f6   :  { %3626 = vmatpush1.bf16.msra.mxu0 %v4973_v3  ;;  %3669 = vmatpush1.bf16.msra.mxu1 %v4976_v6  ;;  %v5068_v3 = vld [vmem:[%s6975_s8 + $0x514] ss:$28 sps:$4 sm:$0xff]   ;;  %v2011_v6 = vld [vmem:[%s6977_s7] sm:$0xf] }
 0x2f7   :  { %3627 = vmatprep.subr.bf16.mxu0 %v4981_v7  ;;  %3670 = vmatprep.subr.bf16.mxu1 %v4984_v8 }
 0x2fa   :  { %3628 = vmatpush1.bf16.msra.mxu0 %v4979_v9  ;;  %3671 = vmatpush1.bf16.msra.mxu1 %v4982_v12  ;;  %v2020_v9 = vrot.slane %v2011_v6, %v6149_v55  ;;  %v2028_v12 = vrot.slane %v2011_v6, %v6161_v32 }
 0x2fb   :  { %3629 = vmatprep.subr.bf16.mxu0 %v4987_v13  ;;  %3672 = vmatprep.subr.bf16.mxu1 %v4990_v15  ;;  %v2016_v13 = vrot.slane %v2011_v6, %v6152_v56  ;;  %v2024_v15 = vrot.slane %v2011_v6, %v6164_v33  ;;  %v5107_v6 = vld [vmem:[%s6975_s8 + $0xc] ss:$28 sps:$4 sm:$0xff]  }
 0x2fe   :  { %3630 = vmatpush1.bf16.msra.mxu0 %v4985_v16  ;;  %3673 = vmatpush1.bf16.msra.mxu1 %v4988_v17 }
 0x2ff   :  { %3631 = vmatprep.subr.bf16.mxu0 %v4993_v18  ;;  %3674 = vmatprep.subr.bf16.mxu1 %v4996_v19 }
 0x302   :  { %3632 = vmatpush1.bf16.msra.mxu0 %v4991_v20  ;;  %3675 = vmatpush1.bf16.msra.mxu1 %v4994_v21 }
 0x303   :  { %3633 = vmatprep.subr.bf16.mxu0 %v4999_v22  ;;  %3676 = vmatprep.subr.bf16.mxu1 %v5002_v23 }
 0x306   :  { %3634 = vmatpush1.bf16.msra.mxu0 %v4997_v5  ;;  %3677 = vmatpush1.bf16.msra.mxu1 %v5000_v51 }
 0x307   :  { %3635 = vmatprep.subr.bf16.mxu0 %v5005_v24  ;;  %3678 = vmatprep.subr.bf16.mxu1 %v5008_v14 }
 0x30a   :  { %3636 = vmatpush1.bf16.msra.mxu0 %v5003_v10  ;;  %3679 = vmatpush1.bf16.msra.mxu1 %v5006_v25 }
 0x30b   :  { %3637 = vmatprep.subr.bf16.mxu0 %v5011_v26  ;;  %3680 = vmatprep.subr.bf16.mxu1 %v5014_v4 }
 0x30e   :  { %3638 = vmatpush1.bf16.msra.mxu0 %v5009_v27  ;;  %3681 = vmatpush1.bf16.msra.mxu1 %v5012_v11 }
 0x30f   :  { %3639 = vmatprep.subr.bf16.mxu0 %v5017_v28  ;;  %3682 = vmatprep.subr.bf16.mxu1 %v5020_v29 }
 0x312   :  { %3640 = vmatpush2.bf16.msra.mxu0 %v5015_v30  ;;  %3683 = vmatpush2.bf16.msra.mxu1 %v5018_v31 }
 0x313   :  { %3641 = vmatprep.subr.bf16.mxu0 %v5023_v34  ;;  %3684 = vmatprep.subr.bf16.mxu1 %v5026_v35 }
 0x316   :  { %3642 = vmatpush2.bf16.msra.mxu0 %v5021_v36  ;;  %3685 = vmatpush2.bf16.msra.mxu1 %v5024_v37  ;;  %v5063_v36 = vld [vmem:[%s6975_s8 + $0x190] ss:$28 sps:$4 sm:$0xff]  }
 0x317   :  { %3643 = vmatprep.subr.bf16.mxu0 %v5029_v38  ;;  %3686 = vmatprep.subr.bf16.mxu1 %v5032_v39  ;;  %v5066_v37 = vld [vmem:[%s6975_s8 + $0x510] ss:$28 sps:$4 sm:$0xff]  }
 0x31a   :  { %3644 = vmatpush2.bf16.msra.mxu0 %v5027_v40  ;;  %3687 = vmatpush2.bf16.msra.mxu1 %v5030_v41  ;;  %v5071_v40 = vld [vmem:[%s6975_s8 + $0x15c] ss:$28 sps:$4 sm:$0xff]  }
 0x31b   :  { %3645 = vmatprep.subr.bf16.mxu0 %v5035_v42  ;;  %3688 = vmatprep.subr.bf16.mxu1 %v5038_v43  ;;  %v5074_v41 = vld [vmem:[%s6975_s8 + $0x4dc] ss:$28 sps:$4 sm:$0xff]  }
 0x31c   :  { %v5069_v42 = vld [vmem:[%s6975_s8 + $0x158] ss:$28 sps:$4 sm:$0xff]  }
 0x31d   :  { %v5072_v43 = vld [vmem:[%s6975_s8 + $0x4d8] ss:$28 sps:$4 sm:$0xff]  }
 0x31e   :  { %3646 = vmatpush2.bf16.msra.mxu0 %v5033_v44  ;;  %3689 = vmatpush2.bf16.msra.mxu1 %v5036_v45  ;;  %v5077_v44 = vld [vmem:[%s6975_s8 + $0x124] ss:$28 sps:$4 sm:$0xff]  }
 0x31f   :  { %3647 = vmatprep.subr.bf16.mxu0 %v5041_v46  ;;  %3690 = vmatprep.subr.bf16.mxu1 %v5044_v47  ;;  %v5080_v45 = vld [vmem:[%s6975_s8 + $0x4a4] ss:$28 sps:$4 sm:$0xff]  }
 0x320   :  { %v5075_v46 = vld [vmem:[%s6975_s8 + $0x120] ss:$28 sps:$4 sm:$0xff]  }
 0x321   :  { %v5078_v47 = vld [vmem:[%s6975_s8 + $0x4a0] ss:$28 sps:$4 sm:$0xff]  }
 0x322   :  { %3648 = vmatpush2.bf16.msra.mxu0 %v5039_v48  ;;  %3691 = vmatpush2.bf16.msra.mxu1 %v5042_v49  ;;  %v5083_v48 = vld [vmem:[%s6975_s8 + $0xec] ss:$28 sps:$4 sm:$0xff]  }
 0x323   :  { %3649 = vmatprep.subr.bf16.mxu0 %v5047_v50  ;;  %3692 = vmatprep.subr.bf16.mxu1 %v5050_v53  ;;  %v5086_v49 = vld [vmem:[%s6975_s8 + $0x46c] ss:$28 sps:$4 sm:$0xff]  }
 0x324   :  { %v5081_v50 = vld [vmem:[%s6975_s8 + $0xe8] ss:$28 sps:$4 sm:$0xff]  }
 0x325   :  { %v5084_v53 = vld [vmem:[%s6975_s8 + $0x468] ss:$28 sps:$4 sm:$0xff]  }
 0x326   :  { %3650 = vmatpush2.bf16.msra.mxu0 %v5045_v54  ;;  %3693 = vmatpush2.bf16.msra.mxu1 %v5048_v57  ;;  %v5089_v54 = vld [vmem:[%s6975_s8 + $0xb4] ss:$28 sps:$4 sm:$0xff]  }
 0x327   :  { %3651 = vmatprep.subr.bf16.mxu0 %v5053_v59  ;;  %3694 = vmatprep.subr.bf16.mxu1 %v5056_v60  ;;  %v5092_v57 = vld [vmem:[%s6975_s8 + $0x434] ss:$28 sps:$4 sm:$0xff]  }
 0x328   :  { %v5087_v59 = vld [vmem:[%s6975_s8 + $0xb0] ss:$28 sps:$4 sm:$0xff]  }
 0x329   :  { %v5090_v60 = vld [vmem:[%s6975_s8 + $0x430] ss:$28 sps:$4 sm:$0xff]  }
 0x32a   :  { %3652 = vmatpush2.bf16.msra.mxu0 %v5051_v61  ;;  %3695 = vmatpush2.bf16.msra.mxu1 %v5054_v62  ;;  %v5095_v61 = vld [vmem:[%s6975_s8 + $0x7c] ss:$28 sps:$4 sm:$0xff]  }
 0x32b   :  { %3653 = vmatprep.subr.bf16.mxu0 %v5059_v58  ;;  %3696 = vmatprep.subr.bf16.mxu1 %v5062_v63  ;;  %v5098_v62 = vld [vmem:[%s6975_s8 + $0x3fc] ss:$28 sps:$4 sm:$0xff]  }
 0x32c   :  { %v5093_v58 = vld [vmem:[%s6975_s8 + $0x78] ss:$28 sps:$4 sm:$0xff]  }
 0x32d   :  { %v5096_v63 = vld [vmem:[%s6975_s8 + $0x3f8] ss:$28 sps:$4 sm:$0xff]  }
 0x32e   :  { %3654 = vmatpush2.bf16.msra.mxu0 %v5057_v0  ;;  %3697 = vmatpush2.bf16.msra.mxu1 %v5060_v1  ;;  %v5101_v0 = vld [vmem:[%s6975_s8 + $0x44] ss:$28 sps:$4 sm:$0xff]  }
 0x32f   :  { %3709 = vmatprep.subr.bf16.mxu0 %v5065_v2  ;;  %3752 = vmatprep.subr.bf16.mxu1 %v5068_v3  ;;  %v5104_v1 = vld [vmem:[%s6975_s8 + $0x3c4] ss:$28 sps:$4 sm:$0xff]  }
 0x330   :  { %v5099_v2 = vld [vmem:[%s6975_s8 + $0x40] ss:$28 sps:$4 sm:$0xff]  }
 0x331   :  { %v5102_v3 = vld [vmem:[%s6975_s8 + $0x3c0] ss:$28 sps:$4 sm:$0xff]  }
 0x3b1   :  { %v2114_v7 = vpop.f32.mrf.mxu0  ;;  %v2157_v8 = vpop.f32.mrf.mxu1 }
 0x3b2   :  { %v2115_v5 = vadd.f32 %v2114_v7, %v2016_v13  ;;  %v2158_v51 = vadd.f32 %v2157_v8, %v2024_v15  ;;  %v5110_v7 = vld [vmem:[%s6975_s8 + $0x38c] ss:$28 sps:$4 sm:$0xff]  }
 0x3b3   :  { %v2116_v16 = vpop.f32.mrf.mxu0  ;;  %v2159_v17 = vpop.f32.mrf.mxu1  ;;  %v5105_v8 = vld [vmem:[%s6975_s8 + $0x8] ss:$28 sps:$4 sm:$0xff]  }
 0x3b4   :  { %v2117_v20 = vadd.f32 %v2116_v16, %v2020_v9  ;;  %v2160_v21 = vadd.f32 %v2159_v17, %v2028_v12  ;;  %v2166_v30 = vmax.f32 %v2115_v5, 0.0  ;;  %v2168_v31 = vmax.f32 %v2158_v51, 0.0  ;;  %v5114_v16 = vld [vmem:[%s6975_s8 + $0x6d0] ss:$28 sps:$4 sm:$0xff]   ;;  %v5119_v17 = vld [vmem:[%s6975_s8 + $0x31c] ss:$28 sps:$4 sm:$0xff]  }
 0x3b5   :  { %v2118_v18 = vpop.f32.mrf.mxu0  ;;  %v2161_v19 = vpop.f32.mrf.mxu1  ;;  %v5126_v5 = vld [vmem:[%s6975_s8 + $0x660] ss:$28 sps:$4 sm:$0xff]   ;;  %v5131_v51 = vld [vmem:[%s6975_s8 + $0x2ac] ss:$28 sps:$4 sm:$0xff]  }
 0x3b6   :  { %v2119_v22 = vadd.f32 %v2118_v18, %v2016_v13  ;;  %v2162_v23 = vadd.f32 %v2161_v19, %v2024_v15  ;;  %v2167_v27 = vmax.f32 %v2117_v20, 0.0  ;;  %v2169_v11 = vmax.f32 %v2160_v21, 0.0  ;;  %v5116_v13 = vld [vmem:[%s6975_s8 + $0x6d4] ss:$28 sps:$4 sm:$0xff]   ;;  %v5122_v18 = vld [vmem:[%s6975_s8 + $0x69c] ss:$28 sps:$4 sm:$0xff]  }
 0x3b7   :  { %v2120_v24 = vpop.f32.mrf.mxu0  ;;  %v2163_v14 = vpop.f32.mrf.mxu1  ;;  %v5111_v15 = vld [vmem:[%s6975_s8 + $0x350] ss:$28 sps:$4 sm:$0xff]   ;;  %v5117_v19 = vld [vmem:[%s6975_s8 + $0x318] ss:$28 sps:$4 sm:$0xff]   ;;  %v5125_v21 = vld [vmem:[%s6975_s8 + $0x2e4] ss:$28 sps:$4 sm:$0xff]  }
 0x3b8   :  { %v2121_v10 = vadd.f32 %v2120_v24, %v2020_v9  ;;  %v2164_v25 = vadd.f32 %v2163_v14, %v2028_v12  ;;  %v2170_v26 = vmax.f32 %v2119_v22, 0.0  ;;  %v2172_v4 = vmax.f32 %v2162_v23, 0.0  ;;  %v5108_v9 = vld [vmem:[%s6975_s8 + $0x388] ss:$28 sps:$4 sm:$0xff]   ;;  %v5113_v12 = vld [vmem:[%s6975_s8 + $0x354] ss:$28 sps:$4 sm:$0xff]  }
 0x3b9   :  { %v5120_v20 = vld [vmem:[%s6975_s8 + $0x698] ss:$28 sps:$4 sm:$0xff]   ;;  %v5128_v22 = vld [vmem:[%s6975_s8 + $0x664] ss:$28 sps:$4 sm:$0xff]   ;;  %v5134_v24 = vld [vmem:[%s6975_s8 + $0x62c] ss:$28 sps:$4 sm:$0xff]  }
 0x3ba   :  { %v2171_v28 = vmax.f32 %v2121_v10, 0.0  ;;  %v2173_v29 = vmax.f32 %v2164_v25, 0.0  ;;  %v6417_v38 = vpack.c.bf16 %v2170_v26, %v2166_v30  ;;  %v6419_v39 = vpack.c.bf16 %v2172_v4, %v2168_v31  ;;  %v5123_v23 = vld [vmem:[%s6975_s8 + $0x2e0] ss:$28 sps:$4 sm:$0xff]   ;;  %v5129_v14 = vld [vmem:[%s6975_s8 + $0x2a8] ss:$28 sps:$4 sm:$0xff]  }
 0x3bb   :  { %v5132_v10 = vld [vmem:[%s6975_s8 + $0x628] ss:$28 sps:$4 sm:$0xff]   ;;  %v5137_v25 = vld [vmem:[%s6975_s8 + $0x274] ss:$28 sps:$4 sm:$0xff]  }
 0x3bc   :  { %v6407_v34 = vpack.c.bf16 %v2171_v28, %v2167_v27  ;;  %v6409_v35 = vpack.c.bf16 %v2173_v29, %v2169_v11  ;;  %v5140_v26 = vld [vmem:[%s6975_s8 + $0x5f4] ss:$28 sps:$4 sm:$0xff]   ;;  %v5143_v11 = vld [vmem:[%s6975_s8 + $0x23c] ss:$28 sps:$4 sm:$0xff]   ;;  %v5149_v31 = vld [vmem:[%s6975_s8 + $0x204] ss:$28 sps:$4 sm:$0xff]  }
 0x3bd   :  { %v5135_v4 = vld [vmem:[%s6975_s8 + $0x270] ss:$28 sps:$4 sm:$0xff]   ;;  %v5146_v28 = vld [vmem:[%s6975_s8 + $0x5bc] ss:$28 sps:$4 sm:$0xff]  }
 0x3be   :  { %3655 = vmatprep.mubr.bf16.mxu0 %v6407_v34  ;;  %3698 = vmatprep.mubr.bf16.mxu1 %v6409_v35  ;;  %v5138_v27 = vld [vmem:[%s6975_s8 + $0x5f0] ss:$28 sps:$4 sm:$0xff]   ;;  %v5141_v29 = vld [vmem:[%s6975_s8 + $0x238] ss:$28 sps:$4 sm:$0xff]  }
 0x3bf   :  { %3656 = vmatmul.mubr.bf16.vlgmr.msra.gmra.mxu0 %v6417_v38  ;;  %3699 = vmatmul.mubr.bf16.vlgmr.msra.gmra.mxu1 %v6419_v39  ;;  %v5144_v30 = vld [vmem:[%s6975_s8 + $0x5b8] ss:$28 sps:$4 sm:$0xff]  }
 0x3c0   :  { %3710 = vmatpush1.bf16.msra.mxu0 %v5063_v36  ;;  %3753 = vmatpush1.bf16.msra.mxu1 %v5066_v37  ;;  %v5152_v36 = vld [vmem:[%s6975_s8 + $0x584] ss:$28 sps:$4 sm:$0xff]  }
 0x3c1   :  { %3741 = vmatprep.mubr.bf16.mxu0 %v6407_v34  ;;  %3784 = vmatprep.mubr.bf16.mxu1 %v6409_v35  ;;  %v5147_v37 = vld [vmem:[%s6975_s8 + $0x200] ss:$28 sps:$4 sm:$0xff]  }
 0x3c2   :  { %3711 = vmatprep.subr.bf16.mxu0 %v5071_v40  ;;  %3754 = vmatprep.subr.bf16.mxu1 %v5074_v41  ;;  %v5150_v40 = vld [vmem:[%s6975_s8 + $0x580] ss:$28 sps:$4 sm:$0xff]   ;;  %v5155_v41 = vld [vmem:[%s6975_s8 + $0x1cc] ss:$28 sps:$4 sm:$0xff]  }
 0x3c4   :  { %3712 = vmatpush1.bf16.msra.mxu0 %v5069_v42  ;;  %3755 = vmatpush1.bf16.msra.mxu1 %v5072_v43  ;;  %v5158_v42 = vld [vmem:[%s6975_s8 + $0x54c] ss:$28 sps:$4 sm:$0xff]  }
 0x3c5   :  { %3713 = vmatprep.subr.bf16.mxu0 %v5077_v44  ;;  %3756 = vmatprep.subr.bf16.mxu1 %v5080_v45  ;;  %v5153_v43 = vld [vmem:[%s6975_s8 + $0x1c8] ss:$28 sps:$4 sm:$0xff]   ;;  %v5161_v45 = vld [vmem:[%s6975_s8 + $0x19c] ss:$28 sps:$4 sm:$0xff]  }
 0x3c6   :  { %v5156_v44 = vld [vmem:[%s6975_s8 + $0x548] ss:$28 sps:$4 sm:$0xff]  }
 0x3c8   :  { %3714 = vmatpush1.bf16.msra.mxu0 %v5075_v46  ;;  %3757 = vmatpush1.bf16.msra.mxu1 %v5078_v47  ;;  %v5164_v46 = vld [vmem:[%s6975_s8 + $0x51c] ss:$28 sps:$4 sm:$0xff]  }
 0x3c9   :  { %3715 = vmatprep.subr.bf16.mxu0 %v5083_v48  ;;  %3758 = vmatprep.subr.bf16.mxu1 %v5086_v49  ;;  %v5159_v47 = vld [vmem:[%s6975_s8 + $0x198] ss:$28 sps:$4 sm:$0xff]   ;;  %v5167_v49 = vld [vmem:[%s6975_s8 + $0x164] ss:$28 sps:$4 sm:$0xff]  }
 0x3ca   :  { %v5162_v48 = vld [vmem:[%s6975_s8 + $0x518] ss:$28 sps:$4 sm:$0xff]  }
 0x3cc   :  { %3716 = vmatpush1.bf16.msra.mxu0 %v5081_v50  ;;  %3759 = vmatpush1.bf16.msra.mxu1 %v5084_v53  ;;  %v5170_v50 = vld [vmem:[%s6975_s8 + $0x4e4] ss:$28 sps:$4 sm:$0xff]  }
 0x3cd   :  { %3717 = vmatprep.subr.bf16.mxu0 %v5089_v54  ;;  %3760 = vmatprep.subr.bf16.mxu1 %v5092_v57  ;;  %v5165_v53 = vld [vmem:[%s6975_s8 + $0x160] ss:$28 sps:$4 sm:$0xff]   ;;  %v5173_v57 = vld [vmem:[%s6975_s8 + $0x12c] ss:$28 sps:$4 sm:$0xff]  }
 0x3ce   :  { %v5168_v54 = vld [vmem:[%s6975_s8 + $0x4e0] ss:$28 sps:$4 sm:$0xff]  }
 0x3d0   :  { %3718 = vmatpush1.bf16.msra.mxu0 %v5087_v59  ;;  %3761 = vmatpush1.bf16.msra.mxu1 %v5090_v60  ;;  %v5176_v59 = vld [vmem:[%s6975_s8 + $0x4ac] ss:$28 sps:$4 sm:$0xff]  }
 0x3d1   :  { %3719 = vmatprep.subr.bf16.mxu0 %v5095_v61  ;;  %3762 = vmatprep.subr.bf16.mxu1 %v5098_v62  ;;  %v5171_v60 = vld [vmem:[%s6975_s8 + $0x128] ss:$28 sps:$4 sm:$0xff]   ;;  %v5179_v62 = vld [vmem:[%s6975_s8 + $0xf4] ss:$28 sps:$4 sm:$0xff]  }
 0x3d2   :  { %v5174_v61 = vld [vmem:[%s6975_s8 + $0x4a8] ss:$28 sps:$4 sm:$0xff]  }
 0x3d4   :  { %3720 = vmatpush1.bf16.msra.mxu0 %v5093_v58  ;;  %3763 = vmatpush1.bf16.msra.mxu1 %v5096_v63  ;;  %v5182_v58 = vld [vmem:[%s6975_s8 + $0x474] ss:$28 sps:$4 sm:$0xff]  }
 0x3d5   :  { %3721 = vmatprep.subr.bf16.mxu0 %v5101_v0  ;;  %3764 = vmatprep.subr.bf16.mxu1 %v5104_v1  ;;  %v5177_v63 = vld [vmem:[%s6975_s8 + $0xf0] ss:$28 sps:$4 sm:$0xff]   ;;  %v5185_v1 = vld [vmem:[%s6975_s8 + $0xbc] ss:$28 sps:$4 sm:$0xff]  }
 0x3d6   :  { %v5180_v0 = vld [vmem:[%s6975_s8 + $0x470] ss:$28 sps:$4 sm:$0xff]  }
 0x3d8   :  { %3722 = vmatpush1.bf16.msra.mxu0 %v5099_v2  ;;  %3765 = vmatpush1.bf16.msra.mxu1 %v5102_v3  ;;  %v5188_v2 = vld [vmem:[%s6975_s8 + $0x43c] ss:$28 sps:$4 sm:$0xff]  }
 0x3d9   :  { %3723 = vmatprep.subr.bf16.mxu0 %v5107_v6  ;;  %3766 = vmatprep.subr.bf16.mxu1 %v5110_v7  ;;  %v5183_v3 = vld [vmem:[%s6975_s8 + $0xb8] ss:$28 sps:$4 sm:$0xff]   ;;  %v5191_v7 = vld [vmem:[%s6975_s8 + $0x84] ss:$28 sps:$4 sm:$0xff]  }
 0x3da   :  { %v5186_v6 = vld [vmem:[%s6975_s8 + $0x438] ss:$28 sps:$4 sm:$0xff]  }
 0x3dc   :  { %3724 = vmatpush1.bf16.msra.mxu0 %v5105_v8  ;;  %3767 = vmatpush1.bf16.msra.mxu1 %v5108_v9  ;;  %v5194_v8 = vld [vmem:[%s6975_s8 + $0x404] ss:$28 sps:$4 sm:$0xff]  }
 0x3dd   :  { %3725 = vmatprep.subr.bf16.mxu0 %v5113_v12  ;;  %3768 = vmatprep.subr.bf16.mxu1 %v5116_v13  ;;  %v5189_v9 = vld [vmem:[%s6975_s8 + $0x80] ss:$28 sps:$4 sm:$0xff]   ;;  %v5197_v13 = vld [vmem:[%s6975_s8 + $0x4c] ss:$28 sps:$4 sm:$0xff]  }
 0x3de   :  { %v5192_v12 = vld [vmem:[%s6975_s8 + $0x400] ss:$28 sps:$4 sm:$0xff]  }
 0x3e0   :  { %3726 = vmatpush2.bf16.msra.mxu0 %v5111_v15  ;;  %3769 = vmatpush2.bf16.msra.mxu1 %v5114_v16  ;;  %v5200_v15 = vld [vmem:[%s6975_s8 + $0x3cc] ss:$28 sps:$4 sm:$0xff]  }
 0x3e1   :  { %3727 = vmatprep.subr.bf16.mxu0 %v5119_v17  ;;  %3770 = vmatprep.subr.bf16.mxu1 %v5122_v18  ;;  %v5195_v16 = vld [vmem:[%s6975_s8 + $0x48] ss:$28 sps:$4 sm:$0xff]   ;;  %v5203_v18 = vld [vmem:[%s6975_s8 + $0x14] ss:$28 sps:$4 sm:$0xff]  }
 0x3e2   :  { %v5198_v17 = vld [vmem:[%s6975_s8 + $0x3c8] ss:$28 sps:$4 sm:$0xff]  }
 0x3e4   :  { %3728 = vmatpush2.bf16.msra.mxu0 %v5117_v19  ;;  %3771 = vmatpush2.bf16.msra.mxu1 %v5120_v20  ;;  %v5206_v19 = vld [vmem:[%s6975_s8 + $0x394] ss:$28 sps:$4 sm:$0xff]  }
 0x3e5   :  { %3729 = vmatprep.subr.bf16.mxu0 %v5125_v21  ;;  %3772 = vmatprep.subr.bf16.mxu1 %v5128_v22  ;;  %v5201_v20 = vld [vmem:[%s6975_s8 + $0x10] ss:$28 sps:$4 sm:$0xff]   ;;  %v5209_v22 = vld [vmem:[%s6975_s8 + $0x35c] ss:$28 sps:$4 sm:$0xff]  }
 0x3e6   :  { %v5204_v21 = vld [vmem:[%s6975_s8 + $0x390] ss:$28 sps:$4 sm:$0xff]  }
 0x3e8   :  { %3730 = vmatpush2.bf16.msra.mxu0 %v5123_v23  ;;  %3773 = vmatpush2.bf16.msra.mxu1 %v5126_v5  ;;  %v5212_v23 = vld [vmem:[%s6975_s8 + $0x6dc] ss:$28 sps:$4 sm:$0xff]  }
 0x3e9   :  { %3731 = vmatprep.subr.bf16.mxu0 %v5131_v51  ;;  %3774 = vmatprep.subr.bf16.mxu1 %v5134_v24  ;;  %v5207_v5 = vld [vmem:[%s6975_s8 + $0x358] ss:$28 sps:$4 sm:$0xff]   ;;  %v5215_v24 = vld [vmem:[%s6975_s8 + $0x324] ss:$28 sps:$4 sm:$0xff]  }
 0x3ea   :  { %v5210_v51 = vld [vmem:[%s6975_s8 + $0x6d8] ss:$28 sps:$4 sm:$0xff]  }
 0x3ec   :  { %3732 = vmatpush2.bf16.msra.mxu0 %v5129_v14  ;;  %3775 = vmatpush2.bf16.msra.mxu1 %v5132_v10  ;;  %v5218_v14 = vld [vmem:[%s6975_s8 + $0x6a4] ss:$28 sps:$4 sm:$0xff]  }
 0x3ed   :  { %3733 = vmatprep.subr.bf16.mxu0 %v5137_v25  ;;  %3776 = vmatprep.subr.bf16.mxu1 %v5140_v26  ;;  %v5213_v10 = vld [vmem:[%s6975_s8 + $0x320] ss:$28 sps:$4 sm:$0xff]   ;;  %v5221_v26 = vld [vmem:[%s6975_s8 + $0x2ec] ss:$28 sps:$4 sm:$0xff]  }
 0x3ee   :  { %v5216_v25 = vld [vmem:[%s6975_s8 + $0x6a0] ss:$28 sps:$4 sm:$0xff]  }
 0x3f0   :  { %3734 = vmatpush2.bf16.msra.mxu0 %v5135_v4  ;;  %3777 = vmatpush2.bf16.msra.mxu1 %v5138_v27  ;;  %v5224_v4 = vld [vmem:[%s6975_s8 + $0x66c] ss:$28 sps:$4 sm:$0xff]  }
 0x3f1   :  { %3735 = vmatprep.subr.bf16.mxu0 %v5143_v11  ;;  %3778 = vmatprep.subr.bf16.mxu1 %v5146_v28  ;;  %v5219_v27 = vld [vmem:[%s6975_s8 + $0x2e8] ss:$28 sps:$4 sm:$0xff]   ;;  %v5227_v28 = vld [vmem:[%s6975_s8 + $0x2b4] ss:$28 sps:$4 sm:$0xff]  }
 0x3f2   :  { %v5222_v11 = vld [vmem:[%s6975_s8 + $0x668] ss:$28 sps:$4 sm:$0xff]  }
 0x3f4   :  { %3736 = vmatpush2.bf16.msra.mxu0 %v5141_v29  ;;  %3779 = vmatpush2.bf16.msra.mxu1 %v5144_v30  ;;  %v5230_v29 = vld [vmem:[%s6975_s8 + $0x634] ss:$28 sps:$4 sm:$0xff]  }
 0x3f5   :  { %3737 = vmatprep.subr.bf16.mxu0 %v5149_v31  ;;  %3780 = vmatprep.subr.bf16.mxu1 %v5152_v36  ;;  %v5225_v30 = vld [vmem:[%s6975_s8 + $0x2b0] ss:$28 sps:$4 sm:$0xff]   ;;  %v5233_v36 = vld [vmem:[%s6975_s8 + $0x27c] ss:$28 sps:$4 sm:$0xff]  }
 0x3f6   :  { %v5228_v31 = vld [vmem:[%s6975_s8 + $0x630] ss:$28 sps:$4 sm:$0xff]  }
 0x3f8   :  { %3738 = vmatpush2.bf16.msra.mxu0 %v5147_v37  ;;  %3781 = vmatpush2.bf16.msra.mxu1 %v5150_v40  ;;  %v5236_v37 = vld [vmem:[%s6975_s8 + $0x5fc] ss:$28 sps:$4 sm:$0xff]  }
 0x3f9   :  { %3739 = vmatprep.subr.bf16.mxu0 %v5155_v41  ;;  %3782 = vmatprep.subr.bf16.mxu1 %v5158_v42  ;;  %v5231_v40 = vld [vmem:[%s6975_s8 + $0x278] ss:$28 sps:$4 sm:$0xff]   ;;  %v5239_v42 = vld [vmem:[%s6975_s8 + $0x244] ss:$28 sps:$4 sm:$0xff]  }
 0x3fa   :  { %v5234_v41 = vld [vmem:[%s6975_s8 + $0x5f8] ss:$28 sps:$4 sm:$0xff]  }
 0x3fc   :  { %3740 = vmatpush2.bf16.msra.mxu0 %v5153_v43  ;;  %3783 = vmatpush2.bf16.msra.mxu1 %v5156_v44  ;;  %v5242_v43 = vld [vmem:[%s6975_s8 + $0x5c4] ss:$28 sps:$4 sm:$0xff]  }
 0x3fd   :  { %3795 = vmatprep.subr.bf16.mxu0 %v5161_v45  ;;  %3838 = vmatprep.subr.bf16.mxu1 %v5164_v46  ;;  %v5237_v44 = vld [vmem:[%s6975_s8 + $0x240] ss:$28 sps:$4 sm:$0xff]   ;;  %v5245_v46 = vld [vmem:[%s6975_s8 + $0x20c] ss:$28 sps:$4 sm:$0xff]  }
 0x3fe   :  { %v5240_v45 = vld [vmem:[%s6975_s8 + $0x5c0] ss:$28 sps:$4 sm:$0xff]  }
 0x3ff   :  { %3742 = vmatmul.mubr.bf16.vlgmr.msra.gmra.mxu0 %v6417_v38  ;;  %3785 = vmatmul.mubr.bf16.vlgmr.msra.gmra.mxu1 %v6419_v39 }
 0x400   :  { %3796 = vmatpush1.bf16.msra.mxu0 %v5159_v47  ;;  %3827 = vmatprep.mubr.bf16.mxu0 %v6407_v34  ;;  %v5248_v47 = vld [vmem:[%s6975_s8 + $0x58c] ss:$28 sps:$4 sm:$0xff]  }
 0x401   :  { %3839 = vmatpush1.bf16.msra.mxu1 %v5162_v48  ;;  %3870 = vmatprep.mubr.bf16.mxu1 %v6409_v35  ;;  %v5243_v48 = vld [vmem:[%s6975_s8 + $0x208] ss:$28 sps:$4 sm:$0xff]  }
 0x402   :  { %3797 = vmatprep.subr.bf16.mxu0 %v5167_v49  ;;  %3840 = vmatprep.subr.bf16.mxu1 %v5170_v50  ;;  %v5246_v49 = vld [vmem:[%s6975_s8 + $0x588] ss:$28 sps:$4 sm:$0xff]   ;;  %v5251_v50 = vld [vmem:[%s6975_s8 + $0x1d4] ss:$28 sps:$4 sm:$0xff]  }
 0x404   :  { %3798 = vmatpush1.bf16.msra.mxu0 %v5165_v53  ;;  %v5254_v53 = vld [vmem:[%s6975_s8 + $0x554] ss:$28 sps:$4 sm:$0xff]  }
 0x405   :  { %3841 = vmatpush1.bf16.msra.mxu1 %v5168_v54  ;;  %3799 = vmatprep.subr.bf16.mxu0 %v5173_v57  ;;  %v5249_v54 = vld [vmem:[%s6975_s8 + $0x1d0] ss:$28 sps:$4 sm:$0xff]  }
 0x406   :  { %3842 = vmatprep.subr.bf16.mxu1 %v5176_v59  ;;  %v5252_v57 = vld [vmem:[%s6975_s8 + $0x550] ss:$28 sps:$4 sm:$0xff]   ;;  %v5255_v59 = vld [vmem:[%s6975_s8 + $0x360] ss:$28 sps:$4 sm:$0xff]  }
 0x408   :  { %3800 = vmatpush1.bf16.msra.mxu0 %v5171_v60  ;;  %v5256_v60 = vld [vmem:[%s6975_s8 + $0x6e0] ss:$28 sps:$4 sm:$0xff]  }
 0x409   :  { %3843 = vmatpush1.bf16.msra.mxu1 %v5174_v61  ;;  %3801 = vmatprep.subr.bf16.mxu0 %v5179_v62  ;;  %v5257_v61 = vld [vmem:[%s6975_s8 + $0x1a0] ss:$28 sps:$4 sm:$0xff]  }
 0x40a   :  { %3844 = vmatprep.subr.bf16.mxu1 %v5182_v58  ;;  %v5258_v62 = vld [vmem:[%s6975_s8 + $0x520] ss:$28 sps:$4 sm:$0xff]   ;;  %v5259_v58 = vld [vmem:[%s6975_s8 + $0x328] ss:$28 sps:$4 sm:$0xff]  }
 0x40c   :  { %3802 = vmatpush1.bf16.msra.mxu0 %v5177_v63  ;;  %v5260_v63 = vld [vmem:[%s6975_s8 + $0x6a8] ss:$28 sps:$4 sm:$0xff]  }
 0x40d   :  { %3845 = vmatpush1.bf16.msra.mxu1 %v5180_v0  ;;  %3803 = vmatprep.subr.bf16.mxu0 %v5185_v1  ;;  %v5261_v0 = vld [vmem:[%s6975_s8 + $0x168] ss:$28 sps:$4 sm:$0xff]  }
 0x40e   :  { %3846 = vmatprep.subr.bf16.mxu1 %v5188_v2  ;;  %v5262_v1 = vld [vmem:[%s6975_s8 + $0x4e8] ss:$28 sps:$4 sm:$0xff]   ;;  %v5263_v2 = vld [vmem:[%s6975_s8 + $0x2f0] ss:$28 sps:$4 sm:$0xff]  }
 0x410   :  { %3804 = vmatpush1.bf16.msra.mxu0 %v5183_v3  ;;  %v5264_v3 = vld [vmem:[%s6975_s8 + $0x670] ss:$28 sps:$4 sm:$0xff]  }
 0x411   :  { %3847 = vmatpush1.bf16.msra.mxu1 %v5186_v6  ;;  %3805 = vmatprep.subr.bf16.mxu0 %v5191_v7  ;;  %v5266_v6 = vld [vmem:[%s6975_s8 + $0x4b0] ss:$28 sps:$4 sm:$0xff]   ;;  %v5268_v7 = vld [vmem:[%s6975_s8 + $0x638] ss:$28 sps:$4 sm:$0xff]  }
 0x412   :  { %3848 = vmatprep.subr.bf16.mxu1 %v5194_v8  ;;  %v5269_v8 = vld [vmem:[%s6975_s8 + $0xf8] ss:$28 sps:$4 sm:$0xff]  }
 0x414   :  { %3806 = vmatpush1.bf16.msra.mxu0 %v5189_v9  ;;  %v5270_v9 = vld [vmem:[%s6975_s8 + $0x478] ss:$28 sps:$4 sm:$0xff]  }
 0x415   :  { %3849 = vmatpush1.bf16.msra.mxu1 %v5192_v12  ;;  %3807 = vmatprep.subr.bf16.mxu0 %v5197_v13  ;;  %v5271_v12 = vld [vmem:[%s6975_s8 + $0x280] ss:$28 sps:$4 sm:$0xff]  }
 0x416   :  { %3850 = vmatprep.subr.bf16.mxu1 %v5200_v15  ;;  %v5272_v13 = vld [vmem:[%s6975_s8 + $0x600] ss:$28 sps:$4 sm:$0xff]  }
 0x417   :  { %v5273_v15 = vld [vmem:[%s6975_s8 + $0xc0] ss:$28 sps:$4 sm:$0xff]  }
 0x418   :  { %3808 = vmatpush1.bf16.msra.mxu0 %v5195_v16  ;;  %v5274_v16 = vld [vmem:[%s6975_s8 + $0x440] ss:$28 sps:$4 sm:$0xff]  }
 0x419   :  { %3851 = vmatpush1.bf16.msra.mxu1 %v5198_v17  ;;  %3809 = vmatprep.subr.bf16.mxu0 %v5203_v18  ;;  %v5275_v17 = vld [vmem:[%s6975_s8 + $0x248] ss:$28 sps:$4 sm:$0xff]  }
 0x41a   :  { %3852 = vmatprep.subr.bf16.mxu1 %v5206_v19  ;;  %v5276_v18 = vld [vmem:[%s6975_s8 + $0x5c8] ss:$28 sps:$4 sm:$0xff]  }
 0x41b   :  { %v5277_v19 = vld [vmem:[%s6975_s8 + $0x88] ss:$28 sps:$4 sm:$0xff]  }
 0x41c   :  { %3810 = vmatpush1.bf16.msra.mxu0 %v5201_v20  ;;  %v5278_v20 = vld [vmem:[%s6975_s8 + $0x408] ss:$28 sps:$4 sm:$0xff]  }
 0x41d   :  { %3853 = vmatpush1.bf16.msra.mxu1 %v5204_v21  ;;  %3811 = vmatprep.subr.bf16.mxu0 %v5209_v22  ;;  %v5279_v21 = vld [vmem:[%s6975_s8 + $0x210] ss:$28 sps:$4 sm:$0xff]  }
 0x41e   :  { %3854 = vmatprep.subr.bf16.mxu1 %v5212_v23  ;;  %v5280_v22 = vld [vmem:[%s6975_s8 + $0x590] ss:$28 sps:$4 sm:$0xff]  }
 0x41f   :  { %v5281_v23 = vld [vmem:[%s6975_s8 + $0x50] ss:$28 sps:$4 sm:$0xff]  }
 0x420   :  { %3812 = vmatpush2.bf16.msra.mxu0 %v5207_v5  ;;  %v5282_v5 = vld [vmem:[%s6975_s8 + $0x3d0] ss:$28 sps:$4 sm:$0xff]  }
 0x421   :  { %3855 = vmatpush2.bf16.msra.mxu1 %v5210_v51  ;;  %3813 = vmatprep.subr.bf16.mxu0 %v5215_v24  ;;  %v5283_v51 = vld [vmem:[%s6975_s8 + $0x1d8] ss:$28 sps:$4 sm:$0xff]  }
 0x422   :  { %3856 = vmatprep.subr.bf16.mxu1 %v5218_v14  ;;  %v5284_v24 = vld [vmem:[%s6975_s8 + $0x558] ss:$28 sps:$4 sm:$0xff]  }
 0x423   :  { %v5285_v14 = vld [vmem:[%s6975_s8 + $0x18] ss:$28 sps:$4 sm:$0xff]  }
 0x424   :  { %3814 = vmatpush2.bf16.msra.mxu0 %v5213_v10  ;;  %v5286_v10 = vld [vmem:[%s6975_s8 + $0x398] ss:$28 sps:$4 sm:$0xff]  }
 0x425   :  { %3857 = vmatpush2.bf16.msra.mxu1 %v5216_v25  ;;  %3815 = vmatprep.subr.bf16.mxu0 %v5221_v26  ;;  %v6908_v25 = vld [vmem:[%s6978_s9] sm:$0x7f] }
 0x426   :  { %3858 = vmatprep.subr.bf16.mxu1 %v5224_v4  ;;  %v2439_v26 = vrot.slane %v6908_v25, %v6152_v56  ;;  %v2443_v4 = vrot.slane %v6908_v25, %v6149_v55 }
 0x428   :  { %3816 = vmatpush2.bf16.msra.mxu0 %v5219_v27 }
 0x429   :  { %3859 = vmatpush2.bf16.msra.mxu1 %v5222_v11  ;;  %3817 = vmatprep.subr.bf16.mxu0 %v5227_v28 }
 0x42a   :  { %3860 = vmatprep.subr.bf16.mxu1 %v5230_v29 }
 0x42c   :  { %3818 = vmatpush2.bf16.msra.mxu0 %v5225_v30 }
 0x42d   :  { %3861 = vmatpush2.bf16.msra.mxu1 %v5228_v31  ;;  %3819 = vmatprep.subr.bf16.mxu0 %v5233_v36 }
 0x42e   :  { %3862 = vmatprep.subr.bf16.mxu1 %v5236_v37 }
 0x430   :  { %3820 = vmatpush2.bf16.msra.mxu0 %v5231_v40 }
 0x431   :  { %3863 = vmatpush2.bf16.msra.mxu1 %v5234_v41  ;;  %3821 = vmatprep.subr.bf16.mxu0 %v5239_v42 }
 0x432   :  { %3864 = vmatprep.subr.bf16.mxu1 %v5242_v43 }
 0x434   :  { %3822 = vmatpush2.bf16.msra.mxu0 %v5237_v44 }
 0x435   :  { %3865 = vmatpush2.bf16.msra.mxu1 %v5240_v45  ;;  %3823 = vmatprep.subr.bf16.mxu0 %v5245_v46 }
 0x436   :  { %3866 = vmatprep.subr.bf16.mxu1 %v5248_v47 }
 0x438   :  { %3824 = vmatpush2.bf16.msra.mxu0 %v5243_v48 }
 0x439   :  { %3867 = vmatpush2.bf16.msra.mxu1 %v5246_v49  ;;  %3825 = vmatprep.subr.bf16.mxu0 %v5251_v50 }
 0x43a   :  { %3868 = vmatprep.subr.bf16.mxu1 %v5254_v53 }
 0x43c   :  { %3826 = vmatpush2.bf16.msra.mxu0 %v5249_v54 }
 0x43d   :  { %3869 = vmatpush2.bf16.msra.mxu1 %v5252_v57  ;;  %4575 = vmatprep.subr.bf16.mxu0 %v5255_v59 }
 0x43e   :  { %4597 = vmatprep.subr.bf16.mxu1 %v5256_v60 }
 0x43f   :  { %3828 = vmatmul.mubr.bf16.vlgmr.msra.gmra.mxu0 %v6417_v38 }
 0x440   :  { %3871 = vmatmul.mubr.bf16.vlgmr.msra.gmra.mxu1 %v6419_v39  ;;  %4576 = vmatpush3.bf16.msra.mxu0 %v5257_v61 }
 0x441   :  { %3913 = vmatprep.mubr.bf16.mxu0 %v6407_v34  ;;  %4598 = vmatpush3.bf16.msra.mxu1 %v5258_v62  ;;  %v5265_v34 = vld [vmem:[%s6975_s8 + $0x130] ss:$28 sps:$4 sm:$0xff]  }
 0x442   :  { %3954 = vmatprep.mubr.bf16.mxu1 %v6409_v35  ;;  %4577 = vmatprep.subr.bf16.mxu0 %v5259_v58  ;;  %v5267_v35 = vld [vmem:[%s6975_s8 + $0x2b8] ss:$28 sps:$4 sm:$0xff]  }
 0x443   :  { %4599 = vmatprep.subr.bf16.mxu1 %v5260_v63 }
 0x444   :  { %4578 = vmatpush3.bf16.msra.mxu0 %v5261_v0 }
 0x445   :  { %4600 = vmatpush3.bf16.msra.mxu1 %v5262_v1  ;;  %4579 = vmatprep.subr.bf16.mxu0 %v5263_v2 }
 0x446   :  { %4601 = vmatprep.subr.bf16.mxu1 %v5264_v3 }
 0x448   :  { %4580 = vmatpush3.bf16.msra.mxu0 %v5265_v34  ;;  %v2447_v34 = vrot.slane %v6908_v25, %v6164_v33 }
 0x449   :  { %4602 = vmatpush3.bf16.msra.mxu1 %v5266_v6  ;;  %4581 = vmatprep.subr.bf16.mxu0 %v5267_v35  ;;  %v2451_v6 = vrot.slane %v6908_v25, %v6161_v32 }
 0x44a   :  { %4603 = vmatprep.subr.bf16.mxu1 %v5268_v7 }
 0x44c   :  { %4582 = vmatpush3.bf16.msra.mxu0 %v5269_v8 }
 0x44d   :  { %4604 = vmatpush3.bf16.msra.mxu1 %v5270_v9  ;;  %4583 = vmatprep.subr.bf16.mxu0 %v5271_v12 }
 0x44e   :  { %4605 = vmatprep.subr.bf16.mxu1 %v5272_v13 }
 0x450   :  { %4584 = vmatpush3.bf16.msra.mxu0 %v5273_v15 }
 0x451   :  { %4606 = vmatpush3.bf16.msra.mxu1 %v5274_v16  ;;  %4585 = vmatprep.subr.bf16.mxu0 %v5275_v17 }
 0x452   :  { %4607 = vmatprep.subr.bf16.mxu1 %v5276_v18 }
 0x454   :  { %4586 = vmatpush3.bf16.msra.mxu0 %v5277_v19 }
 0x455   :  { %4608 = vmatpush3.bf16.msra.mxu1 %v5278_v20  ;;  %4587 = vmatprep.subr.bf16.mxu0 %v5279_v21 }
 0x456   :  { %4609 = vmatprep.subr.bf16.mxu1 %v5280_v22 }
 0x458   :  { %4588 = vmatpush3.bf16.msra.mxu0 %v5281_v23 }
 0x459   :  { %4610 = vmatpush3.bf16.msra.mxu1 %v5282_v5  ;;  %4589 = vmatprep.subr.bf16.mxu0 %v5283_v51 }
 0x45a   :  { %4611 = vmatprep.subr.bf16.mxu1 %v5284_v24 }
 0x45c   :  { %4590 = vmatpush3.bf16.msra.mxu0 %v5285_v14 }
 0x45d   :  { %4612 = vmatpush3.bf16.msra.mxu1 %v5286_v10 }
 0x45f   :  { %3914 = vmatmul.mubr.bf16.vlgmr.msra.gmra.mxu0 %v6417_v38 }
 0x460   :  { %3955 = vmatmul.mubr.bf16.vlgmr.msra.gmra.mxu1 %v6419_v39 }
 0x47f   :  { %v3657_v27 = vpop.f32.mrf.mxu0  ;;  %v3700_v11 = vpop.f32.mrf.mxu1 }
 0x480   :  { %v3658_v28 = vadd.f32 %v3657_v27, %v2439_v26 }
 0x481   :  { %v3659_v29 = vpop.f32.mrf.mxu0  ;;  %v3702_v30 = vpop.f32.mrf.mxu1 }
 0x482   :  { %v3701_v31 = vadd.f32 %v3700_v11, %v3658_v28  ;;  %v3660_v38 = vadd.f32 %v3659_v29, %v2443_v4 }
 0x483   :  { %v3661_v36 = vpop.f32.mrf.mxu0  ;;  %v3704_v39 = vpop.f32.mrf.mxu1 }
 0x484   :  { %v3963_v37 = vsub.f32 0.0, %v3701_v31  ;;  %v3703_v40 = vadd.f32 %v3702_v30, %v3660_v38  ;;  %v3662_v41 = vadd.f32 %v3661_v36, %v2439_v26 }
 0x485   :  { %v3663_v42 = vpop.f32.mrf.mxu0  ;;  %v3706_v46 = vpop.f32.mrf.mxu1 }
 0x486   :  { %v3977_v43 = vmul.f32 1.442695, %v3963_v37  ;;  %v3964_v44 = vsub.f32 0.0, %v3703_v40  ;;  %v3705_v45 = vadd.f32 %v3704_v39, %v3662_v41  ;;  %v3664_v56 = vadd.f32 %v3663_v42, %v2443_v4 }
 0x487   :  { %v2454_v42 = vsub.s32 4, %v6146_v52 }
 0x488   :  { %5291 = vpow2.f32 %v3977_v43  ;;  %v3979_v55 = vmul.f32 1.442695, %v3964_v44  ;;  %v3970_v47 = vsub.f32 0.0, %v3705_v45  ;;  %v3707_v48 = vadd.f32 %v3706_v46, %v3664_v56 }
 0x489   :  { %v2458_v43 = vsub.s32 5, %v6146_v52  ;;  %v2455_v44 = vrot.slane %v6908_v25, %v2454_v42 }
 0x48a   :  { %5293 = vpow2.f32 %v3979_v55  ;;  %v3991_v49 = vmul.f32 1.442695, %v3970_v47  ;;  %v3971_v50 = vsub.f32 0.0, %v3707_v48 }
 0x48b   :  { %v2459_v45 = vrot.slane %v6908_v25, %v2458_v43 }
 0x48c   :  { %5295 = vpow2.f32 %v3991_v49  ;;  %v3993_v53 = vmul.f32 1.442695, %v3971_v50 }
 0x48e   :  { %5297 = vpow2.f32 %v3993_v53 }
 0x495   :  { %v5292_v54 = vpop.eup %5291 }
 0x496   :  { %v4005_v57 = vadd.f32 1.0, %v5292_v54 }
 0x497   :  { %v5294_v59 = vpop.eup %5293 }
 0x498   :  { %5299 = vrcp.f32 %v4005_v57  ;;  %v4006_v60 = vadd.f32 1.0, %v5294_v59 }
 0x499   :  { %v5296_v61 = vpop.eup %5295 }
 0x49a   :  { %5301 = vrcp.f32 %v4006_v60  ;;  %v4012_v62 = vadd.f32 1.0, %v5296_v61 }
 0x49b   :  { %v5298_v58 = vpop.eup %5297 }
 0x49c   :  { %5303 = vrcp.f32 %v4012_v62  ;;  %v4013_v63 = vadd.f32 1.0, %v5298_v58 }
 0x49e   :  { %5305 = vrcp.f32 %v4013_v63 }
 0x4a5   :  { %v5300_v0 = vpop.eup %5299 }
 0x4a6   :  { %4033 = vst [vmem:[%s6979_s10] sm:$0xff] %v5300_v0 }
 0x4a7   :  { %v5302_v1 = vpop.eup %5301 }
 0x4a8   :  { %4034 = vst [vmem:[%s6979_s10 + $0x8] sm:$0xff] %v5302_v1 }
 0x4a9   :  { %v5304_v2 = vpop.eup %5303 }
 0x4aa   :  { %4040 = vst [vmem:[%s6979_s10 + $0x38] sm:$0xff] %v5304_v2 }
 0x4ab   :  { %v5306_v3 = vpop.eup %5305 }
 0x4ac   :  { %4041 = vst [vmem:[%s6979_s10 + $0x40] sm:$0xff] %v5306_v3 }
 0x4bf   :  { %v3743_v35 = vpop.f32.mrf.mxu0  ;;  %v3786_v7 = vpop.f32.mrf.mxu1 }
 0x4c0   :  { %v3744_v8 = vadd.f32 %v3743_v35, %v2447_v34 }
 0x4c1   :  { %v3745_v9 = vpop.f32.mrf.mxu0  ;;  %v3788_v12 = vpop.f32.mrf.mxu1 }
 0x4c2   :  { %v3787_v13 = vadd.f32 %v3786_v7, %v3744_v8  ;;  %v3746_v15 = vadd.f32 %v3745_v9, %v2451_v6 }
 0x4c3   :  { %v3747_v16 = vpop.f32.mrf.mxu0  ;;  %v3790_v17 = vpop.f32.mrf.mxu1 }
 0x4c4   :  { %v3965_v18 = vsub.f32 0.0, %v3787_v13  ;;  %v3789_v19 = vadd.f32 %v3788_v12, %v3746_v15  ;;  %v3748_v20 = vadd.f32 %v3747_v16, %v2447_v34 }
 0x4c5   :  { %v3749_v21 = vpop.f32.mrf.mxu0  ;;  %v3792_v51 = vpop.f32.mrf.mxu1 }
 0x4c6   :  { %v3981_v22 = vmul.f32 1.442695, %v3965_v18  ;;  %v3966_v23 = vsub.f32 0.0, %v3789_v19  ;;  %v3791_v5 = vadd.f32 %v3790_v17, %v3748_v20  ;;  %v3750_v33 = vadd.f32 %v3749_v21, %v2451_v6 }
 0x4c7   :  { %v2462_v19 = vsub.s32 6, %v6146_v52 }
 0x4c8   :  { %5307 = vpow2.f32 %v3981_v22  ;;  %v3983_v32 = vmul.f32 1.442695, %v3966_v23  ;;  %v3972_v24 = vsub.f32 0.0, %v3791_v5  ;;  %v3793_v14 = vadd.f32 %v3792_v51, %v3750_v33 }
 0x4c9   :  { %v2463_v22 = vrot.slane %v6908_v25, %v2462_v19 }
 0x4ca   :  { %5309 = vpow2.f32 %v3983_v32  ;;  %v3995_v10 = vmul.f32 1.442695, %v3972_v24  ;;  %v3973_v26 = vsub.f32 0.0, %v3793_v14 }
 0x4cc   :  { %5311 = vpow2.f32 %v3995_v10  ;;  %v3997_v4 = vmul.f32 1.442695, %v3973_v26 }
 0x4ce   :  { %5313 = vpow2.f32 %v3997_v4 }
 0x4d5   :  { %v5308_v27 = vpop.eup %5307 }
 0x4d6   :  { %v4007_v11 = vadd.f32 1.0, %v5308_v27 }
 0x4d7   :  { %v5310_v28 = vpop.eup %5309 }
 0x4d8   :  { %5315 = vrcp.f32 %v4007_v11  ;;  %v4008_v29 = vadd.f32 1.0, %v5310_v28 }
 0x4d9   :  { %v5312_v30 = vpop.eup %5311 }
 0x4da   :  { %5317 = vrcp.f32 %v4008_v29  ;;  %v4014_v31 = vadd.f32 1.0, %v5312_v30 }
 0x4db   :  { %v5314_v38 = vpop.eup %5313 }
 0x4dc   :  { %5319 = vrcp.f32 %v4014_v31  ;;  %v4015_v36 = vadd.f32 1.0, %v5314_v38 }
 0x4de   :  { %5321 = vrcp.f32 %v4015_v36 }
 0x4e5   :  { %v5316_v39 = vpop.eup %5315 }
 0x4e6   :  { %4035 = vst [vmem:[%s6979_s10 + $0x10] sm:$0xff] %v5316_v39 }
 0x4e7   :  { %v5318_v37 = vpop.eup %5317 }
 0x4e8   :  { %4036 = vst [vmem:[%s6979_s10 + $0x18] sm:$0xff] %v5318_v37 }
 0x4e9   :  { %v5320_v40 = vpop.eup %5319 }
 0x4ea   :  { %4042 = vst [vmem:[%s6979_s10 + $0x48] sm:$0xff] %v5320_v40 }
 0x4eb   :  { %v5322_v41 = vpop.eup %5321 }
 0x4ec   :  { %4043 = vst [vmem:[%s6979_s10 + $0x50] sm:$0xff] %v5322_v41 }
 0x4ff   :  { %v3829_v56 = vpop.f32.mrf.mxu0 }
 0x500   :  { %v3830_v46 = vadd.f32 %v3829_v56, %v2455_v44  ;;  %v3872_v55 = vpop.f32.mrf.mxu1 }
 0x501   :  { %v3831_v47 = vpop.f32.mrf.mxu0 }
 0x502   :  { %v3873_v48 = vadd.f32 %v3872_v55, %v3830_v46  ;;  %v3832_v49 = vadd.f32 %v3831_v47, %v2459_v45  ;;  %v3874_v50 = vpop.f32.mrf.mxu1 }
 0x503   :  { %v3833_v53 = vpop.f32.mrf.mxu0 }
 0x504   :  { %v3967_v54 = vsub.f32 0.0, %v3873_v48  ;;  %v3875_v57 = vadd.f32 %v3874_v50, %v3832_v49  ;;  %v3834_v59 = vadd.f32 %v3833_v53, %v2455_v44  ;;  %v3876_v60 = vpop.f32.mrf.mxu1 }
 0x505   :  { %v3835_v61 = vpop.f32.mrf.mxu0 }
 0x506   :  { %v3985_v62 = vmul.f32 1.442695, %v3967_v54  ;;  %v3968_v58 = vsub.f32 0.0, %v3875_v57  ;;  %v3877_v63 = vadd.f32 %v3876_v60, %v3834_v59  ;;  %v3836_v0 = vadd.f32 %v3835_v61, %v2459_v45  ;;  %v3878_v1 = vpop.f32.mrf.mxu1 }
 0x508   :  { %5323 = vpow2.f32 %v3985_v62  ;;  %v3987_v2 = vmul.f32 1.442695, %v3968_v58  ;;  %v3974_v3 = vsub.f32 0.0, %v3877_v63  ;;  %v3879_v34 = vadd.f32 %v3878_v1, %v3836_v0 }
 0x50a   :  { %5325 = vpow2.f32 %v3987_v2  ;;  %v3999_v6 = vmul.f32 1.442695, %v3974_v3  ;;  %v3975_v35 = vsub.f32 0.0, %v3879_v34 }
 0x50c   :  { %5327 = vpow2.f32 %v3999_v6  ;;  %v4001_v7 = vmul.f32 1.442695, %v3975_v35 }
 0x50e   :  { %5329 = vpow2.f32 %v4001_v7 }
 0x515   :  { %v5324_v8 = vpop.eup %5323 }
 0x516   :  { %v4009_v9 = vadd.f32 1.0, %v5324_v8 }
 0x517   :  { %v5326_v12 = vpop.eup %5325 }
 0x518   :  { %5331 = vrcp.f32 %v4009_v9  ;;  %v4010_v13 = vadd.f32 1.0, %v5326_v12 }
 0x519   :  { %v5328_v15 = vpop.eup %5327 }
 0x51a   :  { %5333 = vrcp.f32 %v4010_v13  ;;  %v4016_v16 = vadd.f32 1.0, %v5328_v15 }
 0x51b   :  { %v5330_v17 = vpop.eup %5329 }
 0x51c   :  { %5335 = vrcp.f32 %v4016_v16  ;;  %v4017_v18 = vadd.f32 1.0, %v5330_v17 }
 0x51e   :  { %5337 = vrcp.f32 %v4017_v18 }
 0x51f   :  { %v4591_v20 = vpop.f32.mrf.mxu0 }
 0x520   :  { %v4613_v21 = vpop.f32.mrf.mxu1 }
 0x521   :  { %v4592_v23 = vpop.f32.mrf.mxu0 }
 0x522   :  { %v4593_v5 = vadd.f32 %v4592_v23, %v4591_v20  ;;  %v4614_v33 = vpop.f32.mrf.mxu1 }
 0x523   :  { %v4594_v51 = vpop.f32.mrf.mxu0  ;;  %v4615_v24 = vadd.f32 %v4614_v33, %v4613_v21 }
 0x524   :  { %v3916_v32 = vadd.f32 %v4593_v5, %v2463_v22  ;;  %v4616_v14 = vpop.f32.mrf.mxu1 }
 0x525   :  { %v5332_v10 = vpop.eup %5331  ;;  %v4595_v26 = vpop.f32.mrf.mxu0 }
 0x526   :  { %4037 = vst [vmem:[%s6979_s10 + $0x20] sm:$0xff] %v5332_v10  ;;  %v3957_v4 = vadd.f32 %v4615_v24, %v3916_v32  ;;  %v4596_v52 = vadd.f32 %v4595_v26, %v4594_v51  ;;  %v4617_v27 = vpop.f32.mrf.mxu1 }
 0x527   :  { %v5334_v11 = vpop.eup %5333  ;;  %v4618_v29 = vadd.f32 %v4617_v27, %v4616_v14 }
 0x528   :  { %4038 = vst [vmem:[%s6979_s10 + $0x28] sm:$0xff] %v5334_v11  ;;  %v3969_v25 = vsub.f32 0.0, %v3957_v4  ;;  %v3919_v28 = vadd.f32 %v4596_v52, %v2463_v22 }
 0x529   :  { %v5336_v30 = vpop.eup %5335 }
 0x52a   :  { %4044 = vst [vmem:[%s6979_s10 + $0x58] sm:$0xff] %v5336_v30  ;;  %v3989_v31 = vmul.f32 1.442695, %v3969_v25  ;;  %v3960_v38 = vadd.f32 %v4618_v29, %v3919_v28 }
 0x52b   :  { %v5338_v36 = vpop.eup %5337 }
 0x52c   :  { %4045 = vst [vmem:[%s6979_s10 + $0x60] sm:$0xff] %v5338_v36  ;;  %5339 = vpow2.f32 %v3989_v31  ;;  %v3976_v39 = vsub.f32 0.0, %v3960_v38 }
 0x52e   :  { %v4003_v37 = vmul.f32 1.442695, %v3976_v39 }
 0x530   :  { %5341 = vpow2.f32 %v4003_v37 }
 0x539   :  { %v5340_v40 = vpop.eup %5339 }
 0x53a   :  { %v4011_v41 = vadd.f32 1.0, %v5340_v40 }
 0x53c   :  { %5343 = vrcp.f32 %v4011_v41 }
 0x53d   :  { %v5342_v42 = vpop.eup %5341 }
 0x53e   :  { %v4018_v43 = vadd.f32 1.0, %v5342_v42 }
 0x540   :  { %5345 = vrcp.f32 %v4018_v43 }
 0x549   :  { %v5344_v44 = vpop.eup %5343 }
 0x54a   :  { %4039 = vst.msk [vmem:[%s6979_s10 + $0x30] sm:$0xff] %vm1279_vm0, %v5344_v44 }
 0x54d   :  { %v5346_v45 = vpop.eup %5345 }
 0x54e   :  { %4046 = vst.msk [vmem:[%s6979_s10 + $0x68] sm:$0xff] %vm1279_vm0, %v5346_v45 }

</bundles_post_ra>
